<compile_context>
chip_gen: v6e
topology: v6e:2x2x1
jax: 0.10.0
libtpu: 0.0.40
codegen_flags: <defaults>
</compile_context>

<pallas_src>
import functools
from typing import NamedTuple

import jax
import jax.numpy as jnp
import numpy as np
from jax.experimental import pallas as pl
from jax.experimental.pallas import tpu as pltpu


# ---------------------------------------------------------------------------
# Fused Pallas kernel (one grid step = one batch sample)
# ---------------------------------------------------------------------------
def _fused_feature_kernel(p1_ref, w1_ref, b1_ref,
                          s2_ref, w2_ref, b2_ref,
                          s3_ref, w3_ref, b3_ref,
                          wl1sp_ref, lin_ref, wl1lin_ref, bl1_ref,
                          wl2_ref, bl2_ref, o_ref):
    f32 = jnp.float32

    def elu(v):
        # ELU(alpha=1); clamp the exp argument so the unselected branch can't overflow.
        return jnp.where(v > 0.0, v, jnp.exp(jnp.minimum(v, 0.0)) - 1.0)

    def conv(x, sel, wts, bias):
        # x: (rows_in, Cin); sel: (kh*kw, rows_out, rows_in); wts: (kh*kw, Cin, Cout)
        acc = None
        for o in range(sel.shape[0]):
            patch = jnp.dot(sel[o], x, preferred_element_type=f32)      # window gather (MXU)
            part = jnp.dot(patch, wts[o], preferred_element_type=f32)   # conv-tap matmul
            acc = part if acc is None else acc + part
        return elu(acc + bias)

    # conv1: patches pre-im2col'd outside (rows = oh1*ow1, K zero-padded to 128 lanes)
    y = jnp.dot(p1_ref[0], w1_ref[...], preferred_element_type=f32) + b1_ref[...]
    y = elu(y)                                                # (oh1*ow1, 32)

    # conv2 / conv3 (3x3, stride 1) via selection matmuls
    y = conv(y, s2_ref[...], w2_ref[...], b2_ref[...])        # (oh2*ow2, 64)
    y = conv(y, s3_ref[...], w3_ref[...], b3_ref[...])        # (oh3*ow3, 64)

    # Flatten (NCHW permutation already folded into wl1sp) + concat(lin_input)
    # + Linear + ReLU
    h = jnp.dot(lin_ref[0], wl1lin_ref[...], preferred_element_type=f32)   # (1, 2F)
    wl1sp = wl1sp_ref[...]
    for s in range(wl1sp.shape[0]):
        h = h + jnp.dot(y[s:s + 1, :], wl1sp[s], preferred_element_type=f32)
    h = jnp.maximum(h + bl1_ref[...], 0.0)

    # Linear + Sigmoid (exact 1/(1+exp); pl.reciprocal(approx=True) is an EUP option
    # but kept exact here to preserve the tight correctness tolerance)
    z = jnp.dot(h, wl2_ref[...], preferred_element_type=f32) + bl2_ref[...]
    o_ref[0] = (1.0 / (1.0 + jnp.exp(-z))).astype(o_ref.dtype)


# ---------------------------------------------------------------------------
# Host-side preparation (runs once): selection matrices + folded/padded weights
# ---------------------------------------------------------------------------
class Meta(NamedTuple):
    stride: int
    ksize: int
    oh1: int
    ow1: int
    k1: int
    k1p: int


def _selection_matrices(oh_in, ow_in, kh, kw, oh_out, ow_out, stride=1):
    """0/1 gather matrices: sel[o] @ x picks the (per-sample) rows of conv window o."""
    sel = np.zeros((kh * kw, oh_out * ow_out, oh_in * ow_in), np.float32)
    for i in range(kh):
        for j in range(kw):
            o = i * kw + j
            for a in range(oh_out):
                for b in range(ow_out):
                    sel[o, a * ow_out + b,
                        (a * stride + i) * ow_in + (b * stride + j)] = 1.0
    return sel


def prepare_params(params, in_channels, state_size, init_stride):
    """Pre-reshape / pre-pad weights and build the in-kernel gather matrices (once)."""
    H, W = state_size
    ks1 = params["c1_w"].shape[-1]                                    # 5
    c1, c2, c3 = (params["c1_w"].shape[0], params["c2_w"].shape[0],
                  params["c3_w"].shape[0])
    oh1 = (H - ks1) // init_stride + 1
    ow1 = (W - ks1) // init_stride + 1
    oh2, ow2 = oh1 - 2, ow1 - 2
    oh3, ow3 = oh2 - 2, ow2 - 2

    k1 = in_channels * ks1 * ks1
    k1p = ((k1 + 127) // 128) * 128                                   # pad K to lane multiple

    f32 = jnp.float32
    # conv1 weight as a (K, Cout) matmul operand with K-order (i, j, c), zero-padded rows
    w1k = jnp.transpose(params["c1_w"].astype(f32), (2, 3, 1, 0)).reshape(k1, c1)
    w1k = jnp.pad(w1k, ((0, k1p - k1), (0, 0)))
    # conv2/3 weights as per-offset (Cin, Cout) blocks, offset o = i*3 + j
    w2o = jnp.transpose(params["c2_w"].astype(f32), (2, 3, 1, 0)).reshape(9, c1, c2)
    w3o = jnp.transpose(params["c3_w"].astype(f32), (2, 3, 1, 0)).reshape(9, c2, c3)

    n_sp = oh3 * ow3
    flat = c3 * n_sp
    l1w = params["l1_w"].astype(f32)           # (flat + L, 2F), rows in NCHW-flatten order
    hh = l1w.shape[1]
    # Fold the PyTorch NCHW flatten permutation into the weight: W1_s[c, :] = l1w[c*n_sp + s]
    wl1_sp = jnp.stack([l1w[s:flat:n_sp, :] for s in range(n_sp)], axis=0)  # (n_sp, c3, 2F)
    wl1_lin = l1w[flat:, :]                                                 # (L, 2F)

    arrays = {
        "w1k": w1k,
        "b1": params["c1_b"].astype(f32).reshape(1, c1),
        "s2": jnp.asarray(_selection_matrices(oh1, ow1, 3, 3, oh2, ow2)),
        "w2o": w2o,
        "b2": params["c2_b"].astype(f32).reshape(1, c2),
        "s3": jnp.asarray(_selection_matrices(oh2, ow2, 3, 3, oh3, ow3)),
        "w3o": w3o,
        "b3": params["c3_b"].astype(f32).reshape(1, c3),
        "wl1_sp": wl1_sp,
        "wl1_lin": wl1_lin,
        "bl1": params["l1_b"].astype(f32).reshape(1, hh),
        "wl2": params["l2_w"].astype(f32),
        "bl2": params["l2_b"].astype(f32).reshape(1, -1),
    }
    meta = Meta(stride=init_stride, ksize=ks1, oh1=oh1, ow1=ow1, k1=k1, k1p=k1p)
    return arrays, meta


# ---------------------------------------------------------------------------
# Forward pass
# ---------------------------------------------------------------------------
@functools.partial(jax.jit, static_argnames=("meta",))
def _forward_impl(arrays, state_nchw, lin_input, *, meta):
    nb, cin = state_nchw.shape[0], state_nchw.shape[1]
    ks, st, oh1, ow1 = meta.ksize, meta.stride, meta.oh1, meta.ow1

    # conv1 im2col on the raw input: NHWC, K-order (i, j, c), zero-padded to k1p lanes.
    x = jnp.transpose(state_nchw, (0, 2, 3, 1)).astype(jnp.float32)
    cols = []
    for i in range(ks):
        for j in range(ks):
            cols.append(x[:, i:i + st * oh1:st, j:j + st * ow1:st, :])  # (nb, oh1, ow1, cin)
    p1 = jnp.stack(cols, axis=3).reshape(nb, oh1 * ow1, ks * ks * cin)
    p1 = jnp.pad(p1, ((0, 0), (0, 0), (0, meta.k1p - meta.k1)))

    lin3 = lin_input.astype(jnp.float32).reshape(nb, 1, -1)
    l_in = lin3.shape[-1]
    f_out = arrays["bl2"].shape[1]

    def const_spec(a):
        return pl.BlockSpec(a.shape, lambda n, _z=(0,) * a.ndim: _z)

    in_specs = [
        pl.BlockSpec((1, oh1 * ow1, meta.k1p), lambda n: (n, 0, 0)),
        const_spec(arrays["w1k"]), const_spec(arrays["b1"]),
        const_spec(arrays["s2"]), const_spec(arrays["w2o"]), const_spec(arrays["b2"]),
        const_spec(arrays["s3"]), const_spec(arrays["w3o"]), const_spec(arrays["b3"]),
        const_spec(arrays["wl1_sp"]),
        pl.BlockSpec((1, 1, l_in), lambda n: (n, 0, 0)),
        const_spec(arrays["wl1_lin"]), const_spec(arrays["bl1"]),
        const_spec(arrays["wl2"]), const_spec(arrays["bl2"]),
    ]

    out = pl.pallas_call(
        _fused_feature_kernel,
        out_shape=jax.ShapeDtypeStruct((nb, 1, f_out), jnp.float32),
        grid=(nb,),
        in_specs=in_specs,
        out_specs=pl.BlockSpec((1, 1, f_out), lambda n: (n, 0, 0)),
        compiler_params=pltpu.CompilerParams(dimension_semantics=("parallel",)),
    )(p1, arrays["w1k"], arrays["b1"],
      arrays["s2"], arrays["w2o"], arrays["b2"],
      arrays["s3"], arrays["w3o"], arrays["b3"],
      arrays["wl1_sp"], lin3, arrays["wl1_lin"], arrays["bl1"],
      arrays["wl2"], arrays["bl2"])
    return out.reshape(nb, f_out)


def feature_extractor_forward(prep, state_nchw, lin_input):
    # TODO(synk): lin_input=None path (PyTorch only supports it when linear_input_size == 0).
    arrays, meta = prep
    return _forward_impl(arrays, state_nchw, lin_input, meta=meta)


# ---------------------------------------------------------------------------
# Parameter init (PyTorch-style layout, so the pure-JAX reference is unchanged)
# ---------------------------------------------------------------------------
def _uniform(key, shape, bound):
    return jax.random.uniform(key, shape, jnp.float32, -bound, bound)


def init_params(key, in_channels, state_size, linear_input_size, feature_size,
                init_stride):
    ks = jax.random.split(key, 10)
    params = {}

    def conv_init(k1, k2, cout, cin, kh, kw):
        fan_in = cin * kh * kw
        bnd = 1.0 / np.sqrt(fan_in)
        return _uniform(k1, (cout, cin, kh, kw), bnd), _uniform(k2, (cout,), bnd)

    params["c1_w"], params["c1_b"] = conv_init(ks[0], ks[1], 32, in_channels, 5, 5)
    params["c2_w"], params["c2_b"] = conv_init(ks[2], ks[3], 64, 32, 3, 3)
    params["c3_w"], params["c3_b"] = conv_init(ks[4], ks[5], 64, 64, 3, 3)

    H, W = state_size
    oh = (H - 5) // init_stride + 1
    ow = (W - 5) // init_stride + 1
    oh, ow = oh - 2, ow - 2
    oh, ow = oh - 2, ow - 2
    flat = 64 * oh * ow
    out_size = flat + linear_input_size

    bnd1 = 1.0 / np.sqrt(out_size)
    params["l1_w"] = _uniform(ks[6], (out_size, feature_size * 2), bnd1)
    params["l1_b"] = _uniform(ks[7], (feature_size * 2,), bnd1)
    bnd2 = 1.0 / np.sqrt(feature_size * 2)
    params["l2_w"] = _uniform(ks[8], (feature_size * 2, feature_size), bnd2)
    params["l2_b"] = _uniform(ks[9], (feature_size,), bnd2)
    return params, out_size


# ---------------------------------------------------------------------------
# Pure-JAX reference (for correctness check only)
# ---------------------------------------------------------------------------
def _reference(params, state, lin_input, init_stride):
    def conv(x, w, b, s):
        y = jax.lax.conv_general_dilated(
            x, w, window_strides=(s, s), padding="VALID",
            dimension_numbers=("NCHW", "OIHW", "NCHW"))
        y = y + b[None, :, None, None]
        return jnp.where(y > 0, y, jnp.exp(jnp.minimum(y, 0.0)) - 1.0)

    x = conv(state, params["c1_w"], params["c1_b"], init_stride)
    x = conv(x, params["c2_w"], params["c2_b"], 1)
    x = conv(x, params["c3_w"], params["c3_b"], 1)
    x = x.reshape(x.shape[0], -1)
    x = jnp.concatenate([x, lin_input], axis=-1)
    h = jnp.maximum(x @ params["l1_w"] + params["l1_b"], 0.0)
    return jax.nn.sigmoid(h @ params["l2_w"] + params["l2_b"])


# ---------------------------------------------------------------------------
if __name__ == "__main__":
    in_channels = 4
    state_size = (16, 16)
    linear_input_size = 8
    feature_size = 32
    init_stride = 2
    batch = 2

    key = jax.random.PRNGKey(0)
    k_param, k_state, k_lin = jax.random.split(key, 3)

    params, out_size = init_params(
        k_param, in_channels, state_size, linear_input_size, feature_size, init_stride)

    state = jax.random.normal(k_state, (batch, in_channels, *state_size), jnp.float32)
    lin_input = jax.random.normal(k_lin, (batch, linear_input_size), jnp.float32)

    prep = prepare_params(params, in_channels, state_size, init_stride)

    out = feature_extractor_forward(prep, state, lin_input)
    out = jax.block_until_ready(out)

    ref = _reference(params, state, lin_input, init_stride)
    np.testing.assert_allclose(np.asarray(out), np.asarray(ref), rtol=1e-4, atol=1e-4)
    assert out.shape == (batch, feature_size)

    print("KERNEL_OK")
</pallas_src>

<mosaic_0001>
module attributes {stable_mosaic.version = 11 : i64} {
  func.func @_fused_feature_kernel(%arg0: i32, %arg1: memref<1x36x128xf32, #tpu.memory_space<vmem>>, %arg2: memref<128x32xf32, #tpu.memory_space<vmem>>, %arg3: memref<1x32xf32, #tpu.memory_space<vmem>>, %arg4: memref<9x16x36xf32, #tpu.memory_space<vmem>>, %arg5: memref<9x32x64xf32, #tpu.memory_space<vmem>>, %arg6: memref<1x64xf32, #tpu.memory_space<vmem>>, %arg7: memref<9x4x16xf32, #tpu.memory_space<vmem>>, %arg8: memref<9x64x64xf32, #tpu.memory_space<vmem>>, %arg9: memref<1x64xf32, #tpu.memory_space<vmem>>, %arg10: memref<4x64x64xf32, #tpu.memory_space<vmem>>, %arg11: memref<1x1x8xf32, #tpu.memory_space<vmem>>, %arg12: memref<8x64xf32, #tpu.memory_space<vmem>>, %arg13: memref<1x64xf32, #tpu.memory_space<vmem>>, %arg14: memref<64x32xf32, #tpu.memory_space<vmem>>, %arg15: memref<1x32xf32, #tpu.memory_space<vmem>>, %arg16: memref<1x1x32xf32, #tpu.memory_space<vmem>>) attributes {dimension_semantics = [#tpu.dimension_semantics<parallel>], iteration_bounds = array<i64: 2>, scalar_prefetch = 0 : i64, scratch_operands = 0 : i64, tpu.core_type = #tpu.core_type<tc>, window_params = [{transform_indices = @transform_0, window_bounds = array<i64: 1, 36, 128>}, {pipeline_mode = #tpu.pipeline_mode<synchronous>, transform_indices = @transform_1, window_bounds = array<i64: 128, 32>}, {pipeline_mode = #tpu.pipeline_mode<synchronous>, transform_indices = @transform_2, window_bounds = array<i64: 1, 32>}, {pipeline_mode = #tpu.pipeline_mode<synchronous>, transform_indices = @transform_3, window_bounds = array<i64: 9, 16, 36>}, {pipeline_mode = #tpu.pipeline_mode<synchronous>, transform_indices = @transform_4, window_bounds = array<i64: 9, 32, 64>}, {pipeline_mode = #tpu.pipeline_mode<synchronous>, transform_indices = @transform_5, window_bounds = array<i64: 1, 64>}, {pipeline_mode = #tpu.pipeline_mode<synchronous>, transform_indices = @transform_6, window_bounds = array<i64: 9, 4, 16>}, {pipeline_mode = #tpu.pipeline_mode<synchronous>, transform_indices = @transform_7, window_bounds = array<i64: 9, 64, 64>}, {pipeline_mode = #tpu.pipeline_mode<synchronous>, transform_indices = @transform_8, window_bounds = array<i64: 1, 64>}, {pipeline_mode = #tpu.pipeline_mode<synchronous>, transform_indices = @transform_9, window_bounds = array<i64: 4, 64, 64>}, {transform_indices = @transform_10, window_bounds = array<i64: 1, 1, 8>}, {pipeline_mode = #tpu.pipeline_mode<synchronous>, transform_indices = @transform_11, window_bounds = array<i64: 8, 64>}, {pipeline_mode = #tpu.pipeline_mode<synchronous>, transform_indices = @transform_12, window_bounds = array<i64: 1, 64>}, {pipeline_mode = #tpu.pipeline_mode<synchronous>, transform_indices = @transform_13, window_bounds = array<i64: 64, 32>}, {pipeline_mode = #tpu.pipeline_mode<synchronous>, transform_indices = @transform_14, window_bounds = array<i64: 1, 32>}, {transform_indices = @transform_15, window_bounds = array<i64: 1, 1, 32>}]} {
    %c0 = arith.constant 0 : index
    %c0_0 = arith.constant 0 : index
    %c0_1 = arith.constant 0 : index
    %0 = vector.load %arg1[%c0, %c0_0, %c0_1] : memref<1x36x128xf32, #tpu.memory_space<vmem>>, vector<1x36x128xf32>
    %1 = vector.shape_cast %0 : vector<1x36x128xf32> to vector<36x128xf32>
    %c0_2 = arith.constant 0 : index
    %c0_3 = arith.constant 0 : index
    %2 = vector.load %arg2[%c0_2, %c0_3] : memref<128x32xf32, #tpu.memory_space<vmem>>, vector<128x32xf32>
    %cst = arith.constant dense<0.000000e+00> : vector<36x32xf32>
    %3 = tpu.matmul %1, %2, %cst {dimension_numbers = #tpu.dot_dimension_numbers<[1], [0], [0], [1], [0, 0, 1, 1], [], []>} : vector<36x128xf32>, vector<128x32xf32>, vector<36x32xf32> -> vector<36x32xf32>
    %c0_4 = arith.constant 0 : index
    %c0_5 = arith.constant 0 : index
    %4 = vector.load %arg3[%c0_4, %c0_5] : memref<1x32xf32, #tpu.memory_space<vmem>>, vector<1x32xf32>
    %5 = vector.broadcast %4 : vector<1x32xf32> to vector<36x32xf32>
    %6 = arith.addf %3, %5 : vector<36x32xf32>
    %cst_6 = arith.constant 0.000000e+00 : f32
    %7 = vector.broadcast %cst_6 : f32 to vector<36x32xf32>
    %8 = arith.cmpf ogt, %6, %7 : vector<36x32xf32>
    %cst_7 = arith.constant 0.000000e+00 : f32
    %9 = vector.broadcast %cst_7 : f32 to vector<36x32xf32>
    %10 = arith.minimumf %6, %9 : vector<36x32xf32>
    %11 = math.exp %10 : vector<36x32xf32>
    %cst_8 = arith.constant 1.000000e+00 : f32
    %12 = vector.broadcast %cst_8 : f32 to vector<36x32xf32>
    %13 = arith.subf %11, %12 : vector<36x32xf32>
    %14 = arith.select %8, %6, %13 : vector<36x32xi1>, vector<36x32xf32>
    %c0_9 = arith.constant 0 : index
    %c0_10 = arith.constant 0 : index
    %c0_11 = arith.constant 0 : index
    %15 = vector.load %arg4[%c0_9, %c0_10, %c0_11] : memref<9x16x36xf32, #tpu.memory_space<vmem>>, vector<9x16x36xf32>
    %c0_12 = arith.constant 0 : index
    %c0_13 = arith.constant 0 : index
    %c0_14 = arith.constant 0 : index
    %16 = vector.load %arg5[%c0_12, %c0_13, %c0_14] : memref<9x32x64xf32, #tpu.memory_space<vmem>>, vector<9x32x64xf32>
    %c0_15 = arith.constant 0 : index
    %c0_16 = arith.constant 0 : index
    %17 = vector.load %arg6[%c0_15, %c0_16] : memref<1x64xf32, #tpu.memory_space<vmem>>, vector<1x64xf32>
    %18 = vector.extract_strided_slice %15 {offsets = [0, 0, 0], sizes = [1, 16, 36], strides = [1, 1, 1]} : vector<9x16x36xf32> to vector<1x16x36xf32>
    %19 = vector.shape_cast %18 : vector<1x16x36xf32> to vector<16x36xf32>
    %cst_17 = arith.constant dense<0.000000e+00> : vector<16x32xf32>
    %20 = tpu.matmul %19, %14, %cst_17 {dimension_numbers = #tpu.dot_dimension_numbers<[1], [0], [0], [1], [0, 0, 1, 1], [], []>} : vector<16x36xf32>, vector<36x32xf32>, vector<16x32xf32> -> vector<16x32xf32>
    %21 = vector.extract_strided_slice %16 {offsets = [0, 0, 0], sizes = [1, 32, 64], strides = [1, 1, 1]} : vector<9x32x64xf32> to vector<1x32x64xf32>
    %22 = vector.shape_cast %21 : vector<1x32x64xf32> to vector<32x64xf32>
    %cst_18 = arith.constant dense<0.000000e+00> : vector<16x64xf32>
    %23 = tpu.matmul %20, %22, %cst_18 {dimension_numbers = #tpu.dot_dimension_numbers<[1], [0], [0], [1], [0, 0, 1, 1], [], []>} : vector<16x32xf32>, vector<32x64xf32>, vector<16x64xf32> -> vector<16x64xf32>
    %24 = vector.extract_strided_slice %15 {offsets = [1, 0, 0], sizes = [1, 16, 36], strides = [1, 1, 1]} : vector<9x16x36xf32> to vector<1x16x36xf32>
    %25 = vector.shape_cast %24 : vector<1x16x36xf32> to vector<16x36xf32>
    %cst_19 = arith.constant dense<0.000000e+00> : vector<16x32xf32>
    %26 = tpu.matmul %25, %14, %cst_19 {dimension_numbers = #tpu.dot_dimension_numbers<[1], [0], [0], [1], [0, 0, 1, 1], [], []>} : vector<16x36xf32>, vector<36x32xf32>, vector<16x32xf32> -> vector<16x32xf32>
    %27 = vector.extract_strided_slice %16 {offsets = [1, 0, 0], sizes = [1, 32, 64], strides = [1, 1, 1]} : vector<9x32x64xf32> to vector<1x32x64xf32>
    %28 = vector.shape_cast %27 : vector<1x32x64xf32> to vector<32x64xf32>
    %cst_20 = arith.constant dense<0.000000e+00> : vector<16x64xf32>
    %29 = tpu.matmul %26, %28, %cst_20 {dimension_numbers = #tpu.dot_dimension_numbers<[1], [0], [0], [1], [0, 0, 1, 1], [], []>} : vector<16x32xf32>, vector<32x64xf32>, vector<16x64xf32> -> vector<16x64xf32>
    %30 = arith.addf %23, %29 : vector<16x64xf32>
    %31 = vector.extract_strided_slice %15 {offsets = [2, 0, 0], sizes = [1, 16, 36], strides = [1, 1, 1]} : vector<9x16x36xf32> to vector<1x16x36xf32>
    %32 = vector.shape_cast %31 : vector<1x16x36xf32> to vector<16x36xf32>
    %cst_21 = arith.constant dense<0.000000e+00> : vector<16x32xf32>
    %33 = tpu.matmul %32, %14, %cst_21 {dimension_numbers = #tpu.dot_dimension_numbers<[1], [0], [0], [1], [0, 0, 1, 1], [], []>} : vector<16x36xf32>, vector<36x32xf32>, vector<16x32xf32> -> vector<16x32xf32>
    %34 = vector.extract_strided_slice %16 {offsets = [2, 0, 0], sizes = [1, 32, 64], strides = [1, 1, 1]} : vector<9x32x64xf32> to vector<1x32x64xf32>
    %35 = vector.shape_cast %34 : vector<1x32x64xf32> to vector<32x64xf32>
    %cst_22 = arith.constant dense<0.000000e+00> : vector<16x64xf32>
    %36 = tpu.matmul %33, %35, %cst_22 {dimension_numbers = #tpu.dot_dimension_numbers<[1], [0], [0], [1], [0, 0, 1, 1], [], []>} : vector<16x32xf32>, vector<32x64xf32>, vector<16x64xf32> -> vector<16x64xf32>
    %37 = arith.addf %30, %36 : vector<16x64xf32>
    %38 = vector.extract_strided_slice %15 {offsets = [3, 0, 0], sizes = [1, 16, 36], strides = [1, 1, 1]} : vector<9x16x36xf32> to vector<1x16x36xf32>
    %39 = vector.shape_cast %38 : vector<1x16x36xf32> to vector<16x36xf32>
    %cst_23 = arith.constant dense<0.000000e+00> : vector<16x32xf32>
    %40 = tpu.matmul %39, %14, %cst_23 {dimension_numbers = #tpu.dot_dimension_numbers<[1], [0], [0], [1], [0, 0, 1, 1], [], []>} : vector<16x36xf32>, vector<36x32xf32>, vector<16x32xf32> -> vector<16x32xf32>
    %41 = vector.extract_strided_slice %16 {offsets = [3, 0, 0], sizes = [1, 32, 64], strides = [1, 1, 1]} : vector<9x32x64xf32> to vector<1x32x64xf32>
    %42 = vector.shape_cast %41 : vector<1x32x64xf32> to vector<32x64xf32>
    %cst_24 = arith.constant dense<0.000000e+00> : vector<16x64xf32>
    %43 = tpu.matmul %40, %42, %cst_24 {dimension_numbers = #tpu.dot_dimension_numbers<[1], [0], [0], [1], [0, 0, 1, 1], [], []>} : vector<16x32xf32>, vector<32x64xf32>, vector<16x64xf32> -> vector<16x64xf32>
    %44 = arith.addf %37, %43 : vector<16x64xf32>
    %45 = vector.extract_strided_slice %15 {offsets = [4, 0, 0], sizes = [1, 16, 36], strides = [1, 1, 1]} : vector<9x16x36xf32> to vector<1x16x36xf32>
    %46 = vector.shape_cast %45 : vector<1x16x36xf32> to vector<16x36xf32>
    %cst_25 = arith.constant dense<0.000000e+00> : vector<16x32xf32>
    %47 = tpu.matmul %46, %14, %cst_25 {dimension_numbers = #tpu.dot_dimension_numbers<[1], [0], [0], [1], [0, 0, 1, 1], [], []>} : vector<16x36xf32>, vector<36x32xf32>, vector<16x32xf32> -> vector<16x32xf32>
    %48 = vector.extract_strided_slice %16 {offsets = [4, 0, 0], sizes = [1, 32, 64], strides = [1, 1, 1]} : vector<9x32x64xf32> to vector<1x32x64xf32>
    %49 = vector.shape_cast %48 : vector<1x32x64xf32> to vector<32x64xf32>
    %cst_26 = arith.constant dense<0.000000e+00> : vector<16x64xf32>
    %50 = tpu.matmul %47, %49, %cst_26 {dimension_numbers = #tpu.dot_dimension_numbers<[1], [0], [0], [1], [0, 0, 1, 1], [], []>} : vector<16x32xf32>, vector<32x64xf32>, vector<16x64xf32> -> vector<16x64xf32>
    %51 = arith.addf %44, %50 : vector<16x64xf32>
    %52 = vector.extract_strided_slice %15 {offsets = [5, 0, 0], sizes = [1, 16, 36], strides = [1, 1, 1]} : vector<9x16x36xf32> to vector<1x16x36xf32>
    %53 = vector.shape_cast %52 : vector<1x16x36xf32> to vector<16x36xf32>
    %cst_27 = arith.constant dense<0.000000e+00> : vector<16x32xf32>
    %54 = tpu.matmul %53, %14, %cst_27 {dimension_numbers = #tpu.dot_dimension_numbers<[1], [0], [0], [1], [0, 0, 1, 1], [], []>} : vector<16x36xf32>, vector<36x32xf32>, vector<16x32xf32> -> vector<16x32xf32>
    %55 = vector.extract_strided_slice %16 {offsets = [5, 0, 0], sizes = [1, 32, 64], strides = [1, 1, 1]} : vector<9x32x64xf32> to vector<1x32x64xf32>
    %56 = vector.shape_cast %55 : vector<1x32x64xf32> to vector<32x64xf32>
    %cst_28 = arith.constant dense<0.000000e+00> : vector<16x64xf32>
    %57 = tpu.matmul %54, %56, %cst_28 {dimension_numbers = #tpu.dot_dimension_numbers<[1], [0], [0], [1], [0, 0, 1, 1], [], []>} : vector<16x32xf32>, vector<32x64xf32>, vector<16x64xf32> -> vector<16x64xf32>
    %58 = arith.addf %51, %57 : vector<16x64xf32>
    %59 = vector.extract_strided_slice %15 {offsets = [6, 0, 0], sizes = [1, 16, 36], strides = [1, 1, 1]} : vector<9x16x36xf32> to vector<1x16x36xf32>
    %60 = vector.shape_cast %59 : vector<1x16x36xf32> to vector<16x36xf32>
    %cst_29 = arith.constant dense<0.000000e+00> : vector<16x32xf32>
    %61 = tpu.matmul %60, %14, %cst_29 {dimension_numbers = #tpu.dot_dimension_numbers<[1], [0], [0], [1], [0, 0, 1, 1], [], []>} : vector<16x36xf32>, vector<36x32xf32>, vector<16x32xf32> -> vector<16x32xf32>
    %62 = vector.extract_strided_slice %16 {offsets = [6, 0, 0], sizes = [1, 32, 64], strides = [1, 1, 1]} : vector<9x32x64xf32> to vector<1x32x64xf32>
    %63 = vector.shape_cast %62 : vector<1x32x64xf32> to vector<32x64xf32>
    %cst_30 = arith.constant dense<0.000000e+00> : vector<16x64xf32>
    %64 = tpu.matmul %61, %63, %cst_30 {dimension_numbers = #tpu.dot_dimension_numbers<[1], [0], [0], [1], [0, 0, 1, 1], [], []>} : vector<16x32xf32>, vector<32x64xf32>, vector<16x64xf32> -> vector<16x64xf32>
    %65 = arith.addf %58, %64 : vector<16x64xf32>
    %66 = vector.extract_strided_slice %15 {offsets = [7, 0, 0], sizes = [1, 16, 36], strides = [1, 1, 1]} : vector<9x16x36xf32> to vector<1x16x36xf32>
    %67 = vector.shape_cast %66 : vector<1x16x36xf32> to vector<16x36xf32>
    %cst_31 = arith.constant dense<0.000000e+00> : vector<16x32xf32>
    %68 = tpu.matmul %67, %14, %cst_31 {dimension_numbers = #tpu.dot_dimension_numbers<[1], [0], [0], [1], [0, 0, 1, 1], [], []>} : vector<16x36xf32>, vector<36x32xf32>, vector<16x32xf32> -> vector<16x32xf32>
    %69 = vector.extract_strided_slice %16 {offsets = [7, 0, 0], sizes = [1, 32, 64], strides = [1, 1, 1]} : vector<9x32x64xf32> to vector<1x32x64xf32>
    %70 = vector.shape_cast %69 : vector<1x32x64xf32> to vector<32x64xf32>
    %cst_32 = arith.constant dense<0.000000e+00> : vector<16x64xf32>
    %71 = tpu.matmul %68, %70, %cst_32 {dimension_numbers = #tpu.dot_dimension_numbers<[1], [0], [0], [1], [0, 0, 1, 1], [], []>} : vector<16x32xf32>, vector<32x64xf32>, vector<16x64xf32> -> vector<16x64xf32>
    %72 = arith.addf %65, %71 : vector<16x64xf32>
    %73 = vector.extract_strided_slice %15 {offsets = [8, 0, 0], sizes = [1, 16, 36], strides = [1, 1, 1]} : vector<9x16x36xf32> to vector<1x16x36xf32>
    %74 = vector.shape_cast %73 : vector<1x16x36xf32> to vector<16x36xf32>
    %cst_33 = arith.constant dense<0.000000e+00> : vector<16x32xf32>
    %75 = tpu.matmul %74, %14, %cst_33 {dimension_numbers = #tpu.dot_dimension_numbers<[1], [0], [0], [1], [0, 0, 1, 1], [], []>} : vector<16x36xf32>, vector<36x32xf32>, vector<16x32xf32> -> vector<16x32xf32>
    %76 = vector.extract_strided_slice %16 {offsets = [8, 0, 0], sizes = [1, 32, 64], strides = [1, 1, 1]} : vector<9x32x64xf32> to vector<1x32x64xf32>
    %77 = vector.shape_cast %76 : vector<1x32x64xf32> to vector<32x64xf32>
    %cst_34 = arith.constant dense<0.000000e+00> : vector<16x64xf32>
    %78 = tpu.matmul %75, %77, %cst_34 {dimension_numbers = #tpu.dot_dimension_numbers<[1], [0], [0], [1], [0, 0, 1, 1], [], []>} : vector<16x32xf32>, vector<32x64xf32>, vector<16x64xf32> -> vector<16x64xf32>
    %79 = arith.addf %72, %78 : vector<16x64xf32>
    %80 = vector.broadcast %17 : vector<1x64xf32> to vector<16x64xf32>
    %81 = arith.addf %79, %80 : vector<16x64xf32>
    %cst_35 = arith.constant 0.000000e+00 : f32
    %82 = vector.broadcast %cst_35 : f32 to vector<16x64xf32>
    %83 = arith.cmpf ogt, %81, %82 : vector<16x64xf32>
    %cst_36 = arith.constant 0.000000e+00 : f32
    %84 = vector.broadcast %cst_36 : f32 to vector<16x64xf32>
    %85 = arith.minimumf %81, %84 : vector<16x64xf32>
    %86 = math.exp %85 : vector<16x64xf32>
    %cst_37 = arith.constant 1.000000e+00 : f32
    %87 = vector.broadcast %cst_37 : f32 to vector<16x64xf32>
    %88 = arith.subf %86, %87 : vector<16x64xf32>
    %89 = arith.select %83, %81, %88 : vector<16x64xi1>, vector<16x64xf32>
    %c0_38 = arith.constant 0 : index
    %c0_39 = arith.constant 0 : index
    %c0_40 = arith.constant 0 : index
    %90 = vector.load %arg7[%c0_38, %c0_39, %c0_40] : memref<9x4x16xf32, #tpu.memory_space<vmem>>, vector<9x4x16xf32>
    %c0_41 = arith.constant 0 : index
    %c0_42 = arith.constant 0 : index
    %c0_43 = arith.constant 0 : index
    %91 = vector.load %arg8[%c0_41, %c0_42, %c0_43] : memref<9x64x64xf32, #tpu.memory_space<vmem>>, vector<9x64x64xf32>
    %c0_44 = arith.constant 0 : index
    %c0_45 = arith.constant 0 : index
    %92 = vector.load %arg9[%c0_44, %c0_45] : memref<1x64xf32, #tpu.memory_space<vmem>>, vector<1x64xf32>
    %93 = vector.extract_strided_slice %90 {offsets = [0, 0, 0], sizes = [1, 4, 16], strides = [1, 1, 1]} : vector<9x4x16xf32> to vector<1x4x16xf32>
    %94 = vector.shape_cast %93 : vector<1x4x16xf32> to vector<4x16xf32>
    %cst_46 = arith.constant dense<0.000000e+00> : vector<4x64xf32>
    %95 = tpu.matmul %94, %89, %cst_46 {dimension_numbers = #tpu.dot_dimension_numbers<[1], [0], [0], [1], [0, 0, 1, 1], [], []>} : vector<4x16xf32>, vector<16x64xf32>, vector<4x64xf32> -> vector<4x64xf32>
    %96 = vector.extract_strided_slice %91 {offsets = [0, 0, 0], sizes = [1, 64, 64], strides = [1, 1, 1]} : vector<9x64x64xf32> to vector<1x64x64xf32>
    %97 = vector.shape_cast %96 : vector<1x64x64xf32> to vector<64x64xf32>
    %cst_47 = arith.constant dense<0.000000e+00> : vector<4x64xf32>
    %98 = tpu.matmul %95, %97, %cst_47 {dimension_numbers = #tpu.dot_dimension_numbers<[1], [0], [0], [1], [0, 0, 1, 1], [], []>} : vector<4x64xf32>, vector<64x64xf32>, vector<4x64xf32> -> vector<4x64xf32>
    %99 = vector.extract_strided_slice %90 {offsets = [1, 0, 0], sizes = [1, 4, 16], strides = [1, 1, 1]} : vector<9x4x16xf32> to vector<1x4x16xf32>
    %100 = vector.shape_cast %99 : vector<1x4x16xf32> to vector<4x16xf32>
    %cst_48 = arith.constant dense<0.000000e+00> : vector<4x64xf32>
    %101 = tpu.matmul %100, %89, %cst_48 {dimension_numbers = #tpu.dot_dimension_numbers<[1], [0], [0], [1], [0, 0, 1, 1], [], []>} : vector<4x16xf32>, vector<16x64xf32>, vector<4x64xf32> -> vector<4x64xf32>
    %102 = vector.extract_strided_slice %91 {offsets = [1, 0, 0], sizes = [1, 64, 64], strides = [1, 1, 1]} : vector<9x64x64xf32> to vector<1x64x64xf32>
    %103 = vector.shape_cast %102 : vector<1x64x64xf32> to vector<64x64xf32>
    %cst_49 = arith.constant dense<0.000000e+00> : vector<4x64xf32>
    %104 = tpu.matmul %101, %103, %cst_49 {dimension_numbers = #tpu.dot_dimension_numbers<[1], [0], [0], [1], [0, 0, 1, 1], [], []>} : vector<4x64xf32>, vector<64x64xf32>, vector<4x64xf32> -> vector<4x64xf32>
    %105 = arith.addf %98, %104 : vector<4x64xf32>
    %106 = vector.extract_strided_slice %90 {offsets = [2, 0, 0], sizes = [1, 4, 16], strides = [1, 1, 1]} : vector<9x4x16xf32> to vector<1x4x16xf32>
    %107 = vector.shape_cast %106 : vector<1x4x16xf32> to vector<4x16xf32>
    %cst_50 = arith.constant dense<0.000000e+00> : vector<4x64xf32>
    %108 = tpu.matmul %107, %89, %cst_50 {dimension_numbers = #tpu.dot_dimension_numbers<[1], [0], [0], [1], [0, 0, 1, 1], [], []>} : vector<4x16xf32>, vector<16x64xf32>, vector<4x64xf32> -> vector<4x64xf32>
    %109 = vector.extract_strided_slice %91 {offsets = [2, 0, 0], sizes = [1, 64, 64], strides = [1, 1, 1]} : vector<9x64x64xf32> to vector<1x64x64xf32>
    %110 = vector.shape_cast %109 : vector<1x64x64xf32> to vector<64x64xf32>
    %cst_51 = arith.constant dense<0.000000e+00> : vector<4x64xf32>
    %111 = tpu.matmul %108, %110, %cst_51 {dimension_numbers = #tpu.dot_dimension_numbers<[1], [0], [0], [1], [0, 0, 1, 1], [], []>} : vector<4x64xf32>, vector<64x64xf32>, vector<4x64xf32> -> vector<4x64xf32>
    %112 = arith.addf %105, %111 : vector<4x64xf32>
    %113 = vector.extract_strided_slice %90 {offsets = [3, 0, 0], sizes = [1, 4, 16], strides = [1, 1, 1]} : vector<9x4x16xf32> to vector<1x4x16xf32>
    %114 = vector.shape_cast %113 : vector<1x4x16xf32> to vector<4x16xf32>
    %cst_52 = arith.constant dense<0.000000e+00> : vector<4x64xf32>
    %115 = tpu.matmul %114, %89, %cst_52 {dimension_numbers = #tpu.dot_dimension_numbers<[1], [0], [0], [1], [0, 0, 1, 1], [], []>} : vector<4x16xf32>, vector<16x64xf32>, vector<4x64xf32> -> vector<4x64xf32>
    %116 = vector.extract_strided_slice %91 {offsets = [3, 0, 0], sizes = [1, 64, 64], strides = [1, 1, 1]} : vector<9x64x64xf32> to vector<1x64x64xf32>
    %117 = vector.shape_cast %116 : vector<1x64x64xf32> to vector<64x64xf32>
    %cst_53 = arith.constant dense<0.000000e+00> : vector<4x64xf32>
    %118 = tpu.matmul %115, %117, %cst_53 {dimension_numbers = #tpu.dot_dimension_numbers<[1], [0], [0], [1], [0, 0, 1, 1], [], []>} : vector<4x64xf32>, vector<64x64xf32>, vector<4x64xf32> -> vector<4x64xf32>
    %119 = arith.addf %112, %118 : vector<4x64xf32>
    %120 = vector.extract_strided_slice %90 {offsets = [4, 0, 0], sizes = [1, 4, 16], strides = [1, 1, 1]} : vector<9x4x16xf32> to vector<1x4x16xf32>
    %121 = vector.shape_cast %120 : vector<1x4x16xf32> to vector<4x16xf32>
    %cst_54 = arith.constant dense<0.000000e+00> : vector<4x64xf32>
    %122 = tpu.matmul %121, %89, %cst_54 {dimension_numbers = #tpu.dot_dimension_numbers<[1], [0], [0], [1], [0, 0, 1, 1], [], []>} : vector<4x16xf32>, vector<16x64xf32>, vector<4x64xf32> -> vector<4x64xf32>
    %123 = vector.extract_strided_slice %91 {offsets = [4, 0, 0], sizes = [1, 64, 64], strides = [1, 1, 1]} : vector<9x64x64xf32> to vector<1x64x64xf32>
    %124 = vector.shape_cast %123 : vector<1x64x64xf32> to vector<64x64xf32>
    %cst_55 = arith.constant dense<0.000000e+00> : vector<4x64xf32>
    %125 = tpu.matmul %122, %124, %cst_55 {dimension_numbers = #tpu.dot_dimension_numbers<[1], [0], [0], [1], [0, 0, 1, 1], [], []>} : vector<4x64xf32>, vector<64x64xf32>, vector<4x64xf32> -> vector<4x64xf32>
    %126 = arith.addf %119, %125 : vector<4x64xf32>
    %127 = vector.extract_strided_slice %90 {offsets = [5, 0, 0], sizes = [1, 4, 16], strides = [1, 1, 1]} : vector<9x4x16xf32> to vector<1x4x16xf32>
    %128 = vector.shape_cast %127 : vector<1x4x16xf32> to vector<4x16xf32>
    %cst_56 = arith.constant dense<0.000000e+00> : vector<4x64xf32>
    %129 = tpu.matmul %128, %89, %cst_56 {dimension_numbers = #tpu.dot_dimension_numbers<[1], [0], [0], [1], [0, 0, 1, 1], [], []>} : vector<4x16xf32>, vector<16x64xf32>, vector<4x64xf32> -> vector<4x64xf32>
    %130 = vector.extract_strided_slice %91 {offsets = [5, 0, 0], sizes = [1, 64, 64], strides = [1, 1, 1]} : vector<9x64x64xf32> to vector<1x64x64xf32>
    %131 = vector.shape_cast %130 : vector<1x64x64xf32> to vector<64x64xf32>
    %cst_57 = arith.constant dense<0.000000e+00> : vector<4x64xf32>
    %132 = tpu.matmul %129, %131, %cst_57 {dimension_numbers = #tpu.dot_dimension_numbers<[1], [0], [0], [1], [0, 0, 1, 1], [], []>} : vector<4x64xf32>, vector<64x64xf32>, vector<4x64xf32> -> vector<4x64xf32>
    %133 = arith.addf %126, %132 : vector<4x64xf32>
    %134 = vector.extract_strided_slice %90 {offsets = [6, 0, 0], sizes = [1, 4, 16], strides = [1, 1, 1]} : vector<9x4x16xf32> to vector<1x4x16xf32>
    %135 = vector.shape_cast %134 : vector<1x4x16xf32> to vector<4x16xf32>
    %cst_58 = arith.constant dense<0.000000e+00> : vector<4x64xf32>
    %136 = tpu.matmul %135, %89, %cst_58 {dimension_numbers = #tpu.dot_dimension_numbers<[1], [0], [0], [1], [0, 0, 1, 1], [], []>} : vector<4x16xf32>, vector<16x64xf32>, vector<4x64xf32> -> vector<4x64xf32>
    %137 = vector.extract_strided_slice %91 {offsets = [6, 0, 0], sizes = [1, 64, 64], strides = [1, 1, 1]} : vector<9x64x64xf32> to vector<1x64x64xf32>
    %138 = vector.shape_cast %137 : vector<1x64x64xf32> to vector<64x64xf32>
    %cst_59 = arith.constant dense<0.000000e+00> : vector<4x64xf32>
    %139 = tpu.matmul %136, %138, %cst_59 {dimension_numbers = #tpu.dot_dimension_numbers<[1], [0], [0], [1], [0, 0, 1, 1], [], []>} : vector<4x64xf32>, vector<64x64xf32>, vector<4x64xf32> -> vector<4x64xf32>
    %140 = arith.addf %133, %139 : vector<4x64xf32>
    %141 = vector.extract_strided_slice %90 {offsets = [7, 0, 0], sizes = [1, 4, 16], strides = [1, 1, 1]} : vector<9x4x16xf32> to vector<1x4x16xf32>
    %142 = vector.shape_cast %141 : vector<1x4x16xf32> to vector<4x16xf32>
    %cst_60 = arith.constant dense<0.000000e+00> : vector<4x64xf32>
    %143 = tpu.matmul %142, %89, %cst_60 {dimension_numbers = #tpu.dot_dimension_numbers<[1], [0], [0], [1], [0, 0, 1, 1], [], []>} : vector<4x16xf32>, vector<16x64xf32>, vector<4x64xf32> -> vector<4x64xf32>
    %144 = vector.extract_strided_slice %91 {offsets = [7, 0, 0], sizes = [1, 64, 64], strides = [1, 1, 1]} : vector<9x64x64xf32> to vector<1x64x64xf32>
    %145 = vector.shape_cast %144 : vector<1x64x64xf32> to vector<64x64xf32>
    %cst_61 = arith.constant dense<0.000000e+00> : vector<4x64xf32>
    %146 = tpu.matmul %143, %145, %cst_61 {dimension_numbers = #tpu.dot_dimension_numbers<[1], [0], [0], [1], [0, 0, 1, 1], [], []>} : vector<4x64xf32>, vector<64x64xf32>, vector<4x64xf32> -> vector<4x64xf32>
    %147 = arith.addf %140, %146 : vector<4x64xf32>
    %148 = vector.extract_strided_slice %90 {offsets = [8, 0, 0], sizes = [1, 4, 16], strides = [1, 1, 1]} : vector<9x4x16xf32> to vector<1x4x16xf32>
    %149 = vector.shape_cast %148 : vector<1x4x16xf32> to vector<4x16xf32>
    %cst_62 = arith.constant dense<0.000000e+00> : vector<4x64xf32>
    %150 = tpu.matmul %149, %89, %cst_62 {dimension_numbers = #tpu.dot_dimension_numbers<[1], [0], [0], [1], [0, 0, 1, 1], [], []>} : vector<4x16xf32>, vector<16x64xf32>, vector<4x64xf32> -> vector<4x64xf32>
    %151 = vector.extract_strided_slice %91 {offsets = [8, 0, 0], sizes = [1, 64, 64], strides = [1, 1, 1]} : vector<9x64x64xf32> to vector<1x64x64xf32>
    %152 = vector.shape_cast %151 : vector<1x64x64xf32> to vector<64x64xf32>
    %cst_63 = arith.constant dense<0.000000e+00> : vector<4x64xf32>
    %153 = tpu.matmul %150, %152, %cst_63 {dimension_numbers = #tpu.dot_dimension_numbers<[1], [0], [0], [1], [0, 0, 1, 1], [], []>} : vector<4x64xf32>, vector<64x64xf32>, vector<4x64xf32> -> vector<4x64xf32>
    %154 = arith.addf %147, %153 : vector<4x64xf32>
    %155 = vector.broadcast %92 : vector<1x64xf32> to vector<4x64xf32>
    %156 = arith.addf %154, %155 : vector<4x64xf32>
    %cst_64 = arith.constant 0.000000e+00 : f32
    %157 = vector.broadcast %cst_64 : f32 to vector<4x64xf32>
    %158 = arith.cmpf ogt, %156, %157 : vector<4x64xf32>
    %cst_65 = arith.constant 0.000000e+00 : f32
    %159 = vector.broadcast %cst_65 : f32 to vector<4x64xf32>
    %160 = arith.minimumf %156, %159 : vector<4x64xf32>
    %161 = math.exp %160 : vector<4x64xf32>
    %cst_66 = arith.constant 1.000000e+00 : f32
    %162 = vector.broadcast %cst_66 : f32 to vector<4x64xf32>
    %163 = arith.subf %161, %162 : vector<4x64xf32>
    %164 = arith.select %158, %156, %163 : vector<4x64xi1>, vector<4x64xf32>
    %c0_67 = arith.constant 0 : index
    %c0_68 = arith.constant 0 : index
    %c0_69 = arith.constant 0 : index
    %165 = vector.load %arg11[%c0_67, %c0_68, %c0_69] : memref<1x1x8xf32, #tpu.memory_space<vmem>>, vector<1x1x8xf32>
    %166 = vector.shape_cast %165 : vector<1x1x8xf32> to vector<1x8xf32>
    %c0_70 = arith.constant 0 : index
    %c0_71 = arith.constant 0 : index
    %167 = vector.load %arg12[%c0_70, %c0_71] : memref<8x64xf32, #tpu.memory_space<vmem>>, vector<8x64xf32>
    %cst_72 = arith.constant dense<0.000000e+00> : vector<1x64xf32>
    %168 = tpu.matmul %166, %167, %cst_72 {dimension_numbers = #tpu.dot_dimension_numbers<[1], [0], [0], [1], [0, 0, 1, 1], [], []>} : vector<1x8xf32>, vector<8x64xf32>, vector<1x64xf32> -> vector<1x64xf32>
    %c0_73 = arith.constant 0 : index
    %c0_74 = arith.constant 0 : index
    %c0_75 = arith.constant 0 : index
    %169 = vector.load %arg10[%c0_73, %c0_74, %c0_75] : memref<4x64x64xf32, #tpu.memory_space<vmem>>, vector<4x64x64xf32>
    %170 = vector.extract_strided_slice %164 {offsets = [0, 0], sizes = [1, 64], strides = [1, 1]} : vector<4x64xf32> to vector<1x64xf32>
    %171 = vector.extract_strided_slice %169 {offsets = [0, 0, 0], sizes = [1, 64, 64], strides = [1, 1, 1]} : vector<4x64x64xf32> to vector<1x64x64xf32>
    %172 = vector.shape_cast %171 : vector<1x64x64xf32> to vector<64x64xf32>
    %cst_76 = arith.constant dense<0.000000e+00> : vector<1x64xf32>
    %173 = tpu.matmul %170, %172, %cst_76 {dimension_numbers = #tpu.dot_dimension_numbers<[1], [0], [0], [1], [0, 0, 1, 1], [], []>} : vector<1x64xf32>, vector<64x64xf32>, vector<1x64xf32> -> vector<1x64xf32>
    %174 = arith.addf %168, %173 : vector<1x64xf32>
    %175 = vector.extract_strided_slice %164 {offsets = [1, 0], sizes = [1, 64], strides = [1, 1]} : vector<4x64xf32> to vector<1x64xf32>
    %176 = vector.extract_strided_slice %169 {offsets = [1, 0, 0], sizes = [1, 64, 64], strides = [1, 1, 1]} : vector<4x64x64xf32> to vector<1x64x64xf32>
    %177 = vector.shape_cast %176 : vector<1x64x64xf32> to vector<64x64xf32>
    %cst_77 = arith.constant dense<0.000000e+00> : vector<1x64xf32>
    %178 = tpu.matmul %175, %177, %cst_77 {dimension_numbers = #tpu.dot_dimension_numbers<[1], [0], [0], [1], [0, 0, 1, 1], [], []>} : vector<1x64xf32>, vector<64x64xf32>, vector<1x64xf32> -> vector<1x64xf32>
    %179 = arith.addf %174, %178 : vector<1x64xf32>
    %180 = vector.extract_strided_slice %164 {offsets = [2, 0], sizes = [1, 64], strides = [1, 1]} : vector<4x64xf32> to vector<1x64xf32>
    %181 = vector.extract_strided_slice %169 {offsets = [2, 0, 0], sizes = [1, 64, 64], strides = [1, 1, 1]} : vector<4x64x64xf32> to vector<1x64x64xf32>
    %182 = vector.shape_cast %181 : vector<1x64x64xf32> to vector<64x64xf32>
    %cst_78 = arith.constant dense<0.000000e+00> : vector<1x64xf32>
    %183 = tpu.matmul %180, %182, %cst_78 {dimension_numbers = #tpu.dot_dimension_numbers<[1], [0], [0], [1], [0, 0, 1, 1], [], []>} : vector<1x64xf32>, vector<64x64xf32>, vector<1x64xf32> -> vector<1x64xf32>
    %184 = arith.addf %179, %183 : vector<1x64xf32>
    %185 = vector.extract_strided_slice %164 {offsets = [3, 0], sizes = [1, 64], strides = [1, 1]} : vector<4x64xf32> to vector<1x64xf32>
    %186 = vector.extract_strided_slice %169 {offsets = [3, 0, 0], sizes = [1, 64, 64], strides = [1, 1, 1]} : vector<4x64x64xf32> to vector<1x64x64xf32>
    %187 = vector.shape_cast %186 : vector<1x64x64xf32> to vector<64x64xf32>
    %cst_79 = arith.constant dense<0.000000e+00> : vector<1x64xf32>
    %188 = tpu.matmul %185, %187, %cst_79 {dimension_numbers = #tpu.dot_dimension_numbers<[1], [0], [0], [1], [0, 0, 1, 1], [], []>} : vector<1x64xf32>, vector<64x64xf32>, vector<1x64xf32> -> vector<1x64xf32>
    %189 = arith.addf %184, %188 : vector<1x64xf32>
    %c0_80 = arith.constant 0 : index
    %c0_81 = arith.constant 0 : index
    %190 = vector.load %arg13[%c0_80, %c0_81] : memref<1x64xf32, #tpu.memory_space<vmem>>, vector<1x64xf32>
    %191 = arith.addf %189, %190 : vector<1x64xf32>
    %cst_82 = arith.constant 0.000000e+00 : f32
    %192 = vector.broadcast %cst_82 : f32 to vector<1x64xf32>
    %193 = arith.maximumf %191, %192 : vector<1x64xf32>
    %c0_83 = arith.constant 0 : index
    %c0_84 = arith.constant 0 : index
    %194 = vector.load %arg14[%c0_83, %c0_84] : memref<64x32xf32, #tpu.memory_space<vmem>>, vector<64x32xf32>
    %cst_85 = arith.constant dense<0.000000e+00> : vector<1x32xf32>
    %195 = tpu.matmul %193, %194, %cst_85 {dimension_numbers = #tpu.dot_dimension_numbers<[1], [0], [0], [1], [0, 0, 1, 1], [], []>} : vector<1x64xf32>, vector<64x32xf32>, vector<1x32xf32> -> vector<1x32xf32>
    %c0_86 = arith.constant 0 : index
    %c0_87 = arith.constant 0 : index
    %196 = vector.load %arg15[%c0_86, %c0_87] : memref<1x32xf32, #tpu.memory_space<vmem>>, vector<1x32xf32>
    %197 = arith.addf %195, %196 : vector<1x32xf32>
    %cst_88 = arith.constant 0.000000e+00 : f32
    %198 = vector.broadcast %cst_88 : f32 to vector<1x32xf32>
    %199 = arith.subf %198, %197 : vector<1x32xf32>
    %200 = math.exp %199 : vector<1x32xf32>
    %cst_89 = arith.constant 1.000000e+00 : f32
    %201 = vector.broadcast %cst_89 : f32 to vector<1x32xf32>
    %202 = arith.addf %201, %200 : vector<1x32xf32>
    %cst_90 = arith.constant 1.000000e+00 : f32
    %203 = vector.broadcast %cst_90 : f32 to vector<1x32xf32>
    %204 = arith.divf %203, %202 : vector<1x32xf32>
    %c0_91 = arith.constant 0 : index
    %c0_92 = arith.constant 0 : index
    %c0_93 = arith.constant 0 : index
    %205 = vector.load %arg16[%c0_91, %c0_92, %c0_93] : memref<1x1x32xf32, #tpu.memory_space<vmem>>, vector<1x1x32xf32>
    %206 = vector.shape_cast %205 : vector<1x1x32xf32> to vector<1x32xf32>
    %207 = vector.shape_cast %204 : vector<1x32xf32> to vector<1x1x32xf32>
    tpu.vector_store %arg16[%c0_91, %c0_92, %c0_93], %207 {strides = array<i32>} : memref<1x1x32xf32, #tpu.memory_space<vmem>>, vector<1x1x32xf32>,
    return
  }
  func.func @transform_0(%arg0: i32) -> (i32, i32, i32) {
    %c0_i32 = arith.constant 0 : i32
    %c0_i32_0 = arith.constant 0 : i32
    %c0_i32_1 = arith.constant 0 : i32
    return %arg0, %c0_i32, %c0_i32_0 : i32, i32, i32
  }
  func.func @transform_1(%arg0: i32) -> (i32, i32) {
    %c0_i32 = arith.constant 0 : i32
    %c0_i32_0 = arith.constant 0 : i32
    %c0_i32_1 = arith.constant 0 : i32
    return %c0_i32, %c0_i32_0 : i32, i32
  }
  func.func @transform_2(%arg0: i32) -> (i32, i32) {
    %c0_i32 = arith.constant 0 : i32
    %c0_i32_0 = arith.constant 0 : i32
    %c0_i32_1 = arith.constant 0 : i32
    return %c0_i32, %c0_i32_0 : i32, i32
  }
  func.func @transform_3(%arg0: i32) -> (i32, i32, i32) {
    %c0_i32 = arith.constant 0 : i32
    %c0_i32_0 = arith.constant 0 : i32
    %c0_i32_1 = arith.constant 0 : i32
    %c0_i32_2 = arith.constant 0 : i32
    return %c0_i32, %c0_i32_0, %c0_i32_1 : i32, i32, i32
  }
  func.func @transform_4(%arg0: i32) -> (i32, i32, i32) {
    %c0_i32 = arith.constant 0 : i32
    %c0_i32_0 = arith.constant 0 : i32
    %c0_i32_1 = arith.constant 0 : i32
    %c0_i32_2 = arith.constant 0 : i32
    return %c0_i32, %c0_i32_0, %c0_i32_1 : i32, i32, i32
  }
  func.func @transform_5(%arg0: i32) -> (i32, i32) {
    %c0_i32 = arith.constant 0 : i32
    %c0_i32_0 = arith.constant 0 : i32
    %c0_i32_1 = arith.constant 0 : i32
    return %c0_i32, %c0_i32_0 : i32, i32
  }
  func.func @transform_6(%arg0: i32) -> (i32, i32, i32) {
    %c0_i32 = arith.constant 0 : i32
    %c0_i32_0 = arith.constant 0 : i32
    %c0_i32_1 = arith.constant 0 : i32
    %c0_i32_2 = arith.constant 0 : i32
    return %c0_i32, %c0_i32_0, %c0_i32_1 : i32, i32, i32
  }
  func.func @transform_7(%arg0: i32) -> (i32, i32, i32) {
    %c0_i32 = arith.constant 0 : i32
    %c0_i32_0 = arith.constant 0 : i32
    %c0_i32_1 = arith.constant 0 : i32
    %c0_i32_2 = arith.constant 0 : i32
    return %c0_i32, %c0_i32_0, %c0_i32_1 : i32, i32, i32
  }
  func.func @transform_8(%arg0: i32) -> (i32, i32) {
    %c0_i32 = arith.constant 0 : i32
    %c0_i32_0 = arith.constant 0 : i32
    %c0_i32_1 = arith.constant 0 : i32
    return %c0_i32, %c0_i32_0 : i32, i32
  }
  func.func @transform_9(%arg0: i32) -> (i32, i32, i32) {
    %c0_i32 = arith.constant 0 : i32
    %c0_i32_0 = arith.constant 0 : i32
    %c0_i32_1 = arith.constant 0 : i32
    %c0_i32_2 = arith.constant 0 : i32
    return %c0_i32, %c0_i32_0, %c0_i32_1 : i32, i32, i32
  }
  func.func @transform_10(%arg0: i32) -> (i32, i32, i32) {
    %c0_i32 = arith.constant 0 : i32
    %c0_i32_0 = arith.constant 0 : i32
    %c0_i32_1 = arith.constant 0 : i32
    return %arg0, %c0_i32, %c0_i32_0 : i32, i32, i32
  }
  func.func @transform_11(%arg0: i32) -> (i32, i32) {
    %c0_i32 = arith.constant 0 : i32
    %c0_i32_0 = arith.constant 0 : i32
    %c0_i32_1 = arith.constant 0 : i32
    return %c0_i32, %c0_i32_0 : i32, i32
  }
  func.func @transform_12(%arg0: i32) -> (i32, i32) {
    %c0_i32 = arith.constant 0 : i32
    %c0_i32_0 = arith.constant 0 : i32
    %c0_i32_1 = arith.constant 0 : i32
    return %c0_i32, %c0_i32_0 : i32, i32
  }
  func.func @transform_13(%arg0: i32) -> (i32, i32) {
    %c0_i32 = arith.constant 0 : i32
    %c0_i32_0 = arith.constant 0 : i32
    %c0_i32_1 = arith.constant 0 : i32
    return %c0_i32, %c0_i32_0 : i32, i32
  }
  func.func @transform_14(%arg0: i32) -> (i32, i32) {
    %c0_i32 = arith.constant 0 : i32
    %c0_i32_0 = arith.constant 0 : i32
    %c0_i32_1 = arith.constant 0 : i32
    return %c0_i32, %c0_i32_0 : i32, i32
  }
  func.func @transform_15(%arg0: i32) -> (i32, i32, i32) {
    %c0_i32 = arith.constant 0 : i32
    %c0_i32_0 = arith.constant 0 : i32
    %c0_i32_1 = arith.constant 0 : i32
    return %arg0, %c0_i32, %c0_i32_0 : i32, i32, i32
  }
}

</mosaic_0001>

<bundles_post_ra>
// kernel: _forward_impl.1
= control target key start
LH: loop header
LB: loop body
LE: loop exit
PB: predicated region body
PF: predicated region fallthrough
CT: control target
= control target key end

     0   :  { %s6493_s0 = inlined_call_operand.vmem [shape: f32[2,36,128], index: 0, kind: input, shape index: {}]   ;;  %s6494_s1 = inlined_call_operand.vmem [shape: f32[128,32], index: 1, kind: input, shape index: {}]   ;;  %s6495_s2 = inlined_call_operand.vmem [shape: f32[1,32], index: 2, kind: input, shape index: {}]   ;;  %s6496_s3 = inlined_call_operand.vmem [shape: f32[9,16,36], index: 3, kind: input, shape index: {}]   ;;  %s6497_s4 = inlined_call_operand.vmem [shape: f32[9,32,64], index: 4, kind: input, shape index: {}]   ;;  %s6498_s5 = inlined_call_operand.vmem [shape: f32[1,64], index: 5, kind: input, shape index: {}]   ;;  %s6499_s6 = inlined_call_operand.vmem [shape: f32[9,4,16], index: 6, kind: input, shape index: {}]   ;;  %s6500_s7 = inlined_call_operand.vmem [shape: f32[9,64,64], index: 7, kind: input, shape index: {}]   ;;  %s6501_s8 = inlined_call_operand.vmem [shape: f32[1,64], index: 8, kind: input, shape index: {}]   ;;  %s6502_s9 = inlined_call_operand.vmem [shape: f32[4,64,64], index: 9, kind: input, shape index: {}]   ;;  %s6503_s10 = inlined_call_operand.vmem [shape: f32[2,1,8], index: 10, kind: input, shape index: {}]   ;;  %s6504_s11 = inlined_call_operand.vmem [shape: f32[8,64], index: 11, kind: input, shape index: {}]   ;;  %s6505_s12 = inlined_call_operand.vmem [shape: f32[1,64], index: 12, kind: input, shape index: {}]   ;;  %s6506_s13 = inlined_call_operand.vmem [shape: f32[64,32], index: 13, kind: input, shape index: {}]   ;;  %s6507_s14 = inlined_call_operand.vmem [shape: f32[1,32], index: 14, kind: input, shape index: {}]   ;;  %s6508_s15 = inlined_call_operand.hbm [shape: f32[2,1,32], index: 15, kind: output, shape index: {}]  }
   0x1   :  { %6514 = sst [smem:[#allocation10_spill]] %s6493_s0 }
   0x2   :  { %20 = vsyncpa [#allocation3], 0 }
   0x3   :  { %22 = vsyncpa [#allocation3 + $0x1], 0  ;;  %s5383_s18 = smov 0   ;;  %s5385_s19 = smov 0  }
   0x4   :  { %s5387_s20 = smov 0   ;;  %s5389_s21 = smov 0  }
   0x5 LB: > { %6515 = sst [smem:[#allocation5_spill]] %s5286_s18  ;;  %s5404_s22 = sadd.s32 4294967295, %s5298_s21   ;;  %s5298_s21 = sphi %s5389_s21, %s6525_s21   ;;  %s5294_s20 = sphi %s5387_s20, %s6527_s20   ;;  %s5290_s19 = sphi %s5385_s19, %s6529_s19   ;;  %s5286_s18 = sphi %s5383_s18, %s6528_s18  }
   0x6   : > { %6516 = sst [smem:[#allocation6_spill]] %s5294_s20  ;;  %s4198_s23 = sadd.s32 4294967294, %s5298_s21  }
   0x7   : > { %s5408_s24 = sadd.s32 1, %s5298_s21   ;;  %s360_s25 = sadd.s32 1, %s5294_s20 }
   0x8   : > { %6517 = sst [smem:[#allocation7_spill]] %s5408_s24  ;;  %s357_s26 = ssub.s32 %s5298_s21, %s5408_s24 }
   0x9   : > { %p370_p0 = scmp.ne.s32.totalorder %s5294_s20, %s5290_s19  ;;  %p358_p1 = scmp.eq.s32.totalorder %s357_s26, 0 }
   0xa   : > { %p371_p2 = scmp.eq.s32.totalorder %s5404_s22, 1  ;;  %p376_p3 = scmp.ne.s32.totalorder %s5290_s19, %s5286_s18 }
   0xb   : > { %p377_p4 = scmp.eq.s32.totalorder %s4198_s23, 1  ;;  %p4201_p7 = scmp.ge.s32.totalorder %s5298_s21, 1 }
   0xc   : > { %s5419_s27 = scalar_select %p358_p1, %s5294_s20, %s360_s25  }
   0xd   : > { %p5421_p5 = por %p371_p2, %p370_p0  ;;  %p5425_p6 = por %p377_p4, %p376_p3 }
   0xe   : > { %6518 = sst [smem:[#allocation8_spill]] %s5419_s27  ;;  %p448_p8 = scmp.lt.s32.totalorder %s5298_s21, 3 }
   0xf   : > { %s6520_s29 = scalar_select %p5425_p6, 1, 0 }
  0x10   : > { %p449_p9 = pnand %p4201_p7, %p448_p8 }
  0x11   : > { %6521 = sst [smem:[#allocation9_spill]] %s6520_s29  ;;  %p498_p10 = scmp.lt.s32.totalorder (!%p449_p9), %s5404_s22, 1 }
  0x12   : > { %452 = sbr.rel (%p449_p9) target bundleno = 3259 (0xcbb), region = 80  ;;  %s6522_s0 = sld [smem:[#allocation10_spill]] (!%p449_p9) }
  0x13   : > { %s496_s18 = sand.u32 (!%p449_p9), 1, %s5290_s19  }
  0x17   : > { %v526_v0 = vld [vmem:[%s6494_s1 + $0x78] sm:$0xff]  ;;  %v5300_v1 = vmov 0.0   ;;  %v525_v2 = vld [vmem:[%s6494_s1 + $0x70] sm:$0xff]  ;;  %vm5301_vm0 = vmmov 0   ;;  %v524_v3 = vld [vmem:[%s6494_s1 + $0x68] sm:$0xff]  ;;  %s5478_s27 = scalar_select %p498_p10, %s5404_s22, 1 }
  0x18   : > { %4579 = vmatprep.subr.mxu0 %v5300_v1  ;;  %4611 = vmatprep.mubr.msk.f32.mxu0 %vm5301_vm0, %v5300_v1  ;;  %v523_v4 = vld [vmem:[%s6494_s1 + $0x60] sm:$0xff]  ;;  %v522_v5 = vld [vmem:[%s6494_s1 + $0x58] sm:$0xff]  ;;  %v521_v6 = vld [vmem:[%s6494_s1 + $0x50] sm:$0xff]  ;;  %vm709_vm1 = vcmask 293888   ;;  %vm716_vm2 = vcmask 1043456   ;;  %vm876_vm8 = vcmask 261120  }
  0x19   : > { %4580 = vmatpush3.msra.mxu0 %v526_v0  ;;  %v520_v7 = vld [vmem:[%s6494_s1 + $0x48] sm:$0xff]  ;;  %v519_v8 = vld [vmem:[%s6494_s1 + $0x40] sm:$0xff]  ;;  %v518_v9 = vld [vmem:[%s6494_s1 + $0x38] sm:$0xff]  ;;  %s5176_s20 = smul.u32 40, %s5478_s27  ;;  %vm2289_vm11 = vcmask 130048   ;;  %vm2436_vm12 = vcmask 523264   ;;  %s505_s24 = scalar_lea.vmem %s6503_s10, %s5478_s27 }
  0x1a   : > { %4581 = vmatprep.subr.mxu0 %v5300_v1  ;;  %v517_v10 = vld [vmem:[%s6494_s1 + $0x30] sm:$0xff]  ;;  %v516_v11 = vld [vmem:[%s6494_s1 + $0x28] sm:$0xff]  ;;  %v515_v12 = vld [vmem:[%s6494_s1 + $0x20] sm:$0xff]  ;;  %vm3732_vm13 = vcmask 64512   ;;  %vm4119_vm15 = vcmask 253952   ;;  %s4122_s27 = scalar_lea.sflag [#allocation3], %s496_s18 }
  0x1b   : > { %4582 = vmatpush3.msra.mxu0 %v525_v2  ;;  %v514_v13 = vld [vmem:[%s6494_s1 + $0x18] sm:$0xff]  ;;  %v513_v14 = vld [vmem:[%s6494_s1 + $0x10] sm:$0xff]  ;;  %v512_v15 = vld [vmem:[%s6494_s1 + $0x8] sm:$0xff]  ;;  %s502_s30 = scalar_lea.vmem %s6522_s0, %s5176_s20  ;;  %s4283_s20 = sshll.u32 %s5404_s22, 4 }
  0x1c   : > { %4583 = vmatprep.subr.mxu0 %v5300_v1  ;;  %v511_v16 = vld [vmem:[%s6494_s1] sm:$0xff]  ;;  %v507_v18 = vld [vmem:[%s502_s30 + $0x8] sm:$0xff]  ;;  %v508_v19 = vld [vmem:[%s502_s30 + $0x10] sm:$0xff]  ;;  %s6458_s25 = scalar_lea.hbm %s6508_s15, %s4283_s20  ;;  %s5302_s0 = smov [#allocation2]  }
  0x1d   : > { %4584 = vmatpush3.msra.mxu0 %v524_v3  ;;  %v506_v17 = vld [vmem:[%s502_s30] sm:$0xff]  ;;  %v509_v20 = vld [vmem:[%s502_s30 + $0x18] sm:$0xff]  ;;  %v655_v0 = vld [vmem:[%s6496_s3 + $0x8] sm:$0xff] }
  0x1e   : > { %4585 = vmatprep.subr.mxu0 %v5300_v1  ;;  %v510_v21 = vld [vmem:[%s502_s30 + $0x20] sm:$0xf]  ;;  %v656_v2 = vld [vmem:[%s6496_s3 + $0x10] sm:$0xff]  ;;  %v657_v3 = vld [vmem:[%s6496_s3 + $0x18] sm:$0xff]  ;;  %s5242_s30 = sshll.u32 %s5302_s0, 4  ;;  %s5243_s30 = int_to_ptr.vmem [resolvable:$false] %s5242_s30 }
  0x1f   : > { %4586 = vmatpush3.msra.mxu0 %v523_v4  ;;  %v654_v22 = vld [vmem:[%s6496_s3] sm:$0xff]  ;;  %v679_v4 = vld [vmem:[%s6497_s4 + $0x38] sm:$0xff]  ;;  %s5244_s22 = scalar_lea.vmem %s5243_s30, 32 }
  0x20   : > { %4587 = vmatprep.subr.mxu0 %v5300_v1  ;;  %4636 = vmatprep.mubr.msk.f32.mxu1 %vm709_vm1, %v654_v22  ;;  %v4203_v28 = vld [vmem:[%s6495_s2] ss:$0 sm:$0xff]  ;;  %v664_v22 = vld [vmem:[%s6496_s3 + $0x50] sm:$0xff] }
  0x21   : > { %4588 = vmatpush3.msra.mxu0 %v522_v5  ;;  %v678_v5 = vld [vmem:[%s6497_s4 + $0x30] sm:$0xff] }
  0x22   : > { %4589 = vmatprep.subr.mxu0 %v5300_v1 }
  0x23   : > { %4590 = vmatpush3.msra.mxu0 %v521_v6  ;;  %v677_v6 = vld [vmem:[%s6497_s4 + $0x28] sm:$0xff] }
  0x24   : > { %4591 = vmatprep.subr.mxu0 %v5300_v1 }
  0x25   : > { %4592 = vmatpush3.msra.mxu0 %v520_v7  ;;  %v676_v7 = vld [vmem:[%s6497_s4 + $0x20] sm:$0xff] }
  0x26   : > { %4593 = vmatprep.subr.mxu0 %v5300_v1 }
  0x27   : > { %4594 = vmatpush3.msra.mxu0 %v519_v8  ;;  %v675_v8 = vld [vmem:[%s6497_s4 + $0x18] sm:$0xff] }
  0x28   : > { %4595 = vmatprep.subr.mxu0 %v5300_v1 }
  0x29   : > { %4596 = vmatpush3.msra.mxu0 %v518_v9 }
  0x2a   : > { %4597 = vmatprep.subr.mxu0 %v5300_v1 }
  0x2b   : > { %4598 = vmatpush3.msra.mxu0 %v517_v10 }
  0x2c   : > { %4599 = vmatprep.subr.mxu0 %v5300_v1 }
  0x2d   : > { %4600 = vmatpush3.msra.mxu0 %v516_v11 }
  0x2e   : > { %4601 = vmatprep.subr.mxu0 %v5300_v1 }
  0x2f   : > { %4602 = vmatpush3.msra.mxu0 %v515_v12 }
  0x30   : > { %4603 = vmatprep.subr.mxu0 %v5300_v1 }
  0x31   : > { %4604 = vmatpush3.msra.mxu0 %v514_v13  ;;  %v674_v13 = vld [vmem:[%s6497_s4 + $0x10] sm:$0xff] }
  0x32   : > { %4605 = vmatprep.subr.mxu0 %v5300_v1 }
  0x33   : > { %4606 = vmatpush3.msra.mxu0 %v513_v14  ;;  %v673_v14 = vld [vmem:[%s6497_s4 + $0x8] sm:$0xff] }
  0x34   : > { %4607 = vmatprep.subr.mxu0 %v5300_v1 }
  0x35   : > { %4608 = vmatpush3.msra.mxu0 %v512_v15  ;;  %v672_v15 = vld [vmem:[%s6497_s4] sm:$0xff] }
  0x36   : > { %4609 = vmatprep.subr.mxu0 %v5300_v1 }
  0x37   : > { %4610 = vmatpush3.msra.mxu0 %v511_v16  ;;  %v658_v16 = vld [vmem:[%s6496_s3 + $0x20] sm:$0xff] }
  0x38   : > { %4612 = vmatmul.mubr.f32.vlgmr.msra.gmra.mxu0 %v506_v17  ;;  %v659_v17 = vld [vmem:[%s6496_s3 + $0x28] sm:$0xff] }
  0x39   : > { %4614 = vmatprep.mubr.msk.f32.mxu0 %vm5301_vm0, %v5300_v1 }
  0x3c   : > { %4615 = vmatmul.mubr.f32.gmra.mxu0 %v507_v18  ;;  %v660_v18 = vld [vmem:[%s6496_s3 + $0x30] sm:$0xff] }
  0x3d   : > { %4617 = vmatprep.mubr.msk.f32.mxu0 %vm5301_vm0, %v5300_v1 }
  0x40   : > { %4618 = vmatmul.mubr.f32.gmra.mxu0 %v508_v19  ;;  %v661_v19 = vld [vmem:[%s6496_s3 + $0x38] sm:$0xff] }
  0x41   : > { %4620 = vmatprep.mubr.msk.f32.mxu0 %vm5301_vm0, %v5300_v1 }
  0x44   : > { %4621 = vmatmul.mubr.f32.gmra.mxu0 %v509_v20  ;;  %v662_v20 = vld [vmem:[%s6496_s3 + $0x40] sm:$0xff] }
  0x45   : > { %4623 = vmatprep.mubr.msk.f32.mxu0 %vm5301_vm0, %v5300_v1 }
  0x48   : > { %4624 = vmatmul.mubr.f32.gmra.mxu0 %v510_v21  ;;  %v663_v21 = vld [vmem:[%s6496_s3 + $0x48] sm:$0xff] }
  0xf8   : > { %v600_v23 = vpop.f32.mrf.mxu0 }
  0xf9   : > { %v601_v36 = vadd.f32 %v4203_v28, %v600_v23  ;;  %v665_v23 = vld [vmem:[%s6496_s3 + $0x58] sm:$0xff] }
  0xfa   : > { %v4613_v24 = vpop.f32.mrf.mxu0 }
  0xfb   : > { %v629_v44 = vmin.f32 %v601_v36, 0.0  ;;  %vm624_vm7 = vcmp.gt.f32.partialorder %v601_v36, 0.0  ;;  %v699_v24 = vld [vmem:[%s6497_s4 + $0xd8] sm:$0xff] }
  0xfc   : > { %v605_v25 = vpop.f32.mrf.mxu0 }
  0xfd   : > { %v606_v32 = vadd.f32 %v4203_v28, %v605_v25  ;;  %v634_v48 = vmul.f32 1.442695, %v629_v44  ;;  %v698_v25 = vld [vmem:[%s6497_s4 + $0xd0] sm:$0xff]  ;;  %v691_v44 = vld [vmem:[%s6497_s4 + $0x98] sm:$0xff] }
  0xfe   : > { %v4616_v26 = vpop.f32.mrf.mxu0 }
  0xff   : > { %v630_v39 = vmin.f32 %v606_v32, 0.0  ;;  %vm625_vm6 = vcmp.gt.f32.partialorder %v606_v32, 0.0  ;;  %v697_v26 = vld [vmem:[%s6497_s4 + $0xc8] sm:$0xff] }
 0x100   : > { %v610_v27 = vpop.f32.mrf.mxu0 }
 0x101   : > { %v611_v29 = vadd.f32 %v4203_v28, %v610_v27  ;;  %v636_v46 = vmul.f32 1.442695, %v630_v39  ;;  %v696_v27 = vld [vmem:[%s6497_s4 + $0xc0] sm:$0xff] }
 0x102   : > { %v4619_v30 = vpop.f32.mrf.mxu0 }
 0x103   : > { %v631_v34 = vmin.f32 %v611_v29, 0.0  ;;  %vm626_vm5 = vcmp.gt.f32.partialorder %v611_v29, 0.0  ;;  %v681_v30 = vld [vmem:[%s6497_s4 + $0x48] sm:$0xff] }
 0x104   : > { %v615_v31 = vpop.f32.mrf.mxu0 }
 0x105   : > { %v616_v33 = vadd.f32 %v4203_v28, %v615_v31  ;;  %v638_v42 = vmul.f32 1.442695, %v631_v34  ;;  %v680_v31 = vld [vmem:[%s6497_s4 + $0x40] sm:$0xff] }
 0x106   : > { %v4622_v35 = vpop.f32.mrf.mxu0 }
 0x107   : > { %v632_v37 = vmin.f32 %v616_v33, 0.0  ;;  %vm627_vm4 = vcmp.gt.f32.partialorder %v616_v33, 0.0 }
 0x108   : > { %v620_v38 = vpop.f32.mrf.mxu0 }
 0x109   : > { %v640_v40 = vmul.f32 1.442695, %v632_v37  ;;  %v621_v41 = vadd.f32 %v4203_v28, %v620_v38  ;;  %v683_v28 = vld [vmem:[%s6497_s4 + $0x58] sm:$0xff] }
 0x10a   : > { %v4625_v43 = vpop.f32.mrf.mxu0  ;;  %4687 = vmatprep.subr.mxu0 %v683_v28 }
 0x10b   : > { %v633_v45 = vmin.f32 %v621_v41, 0.0  ;;  %5218 = vpow2.f32 %v640_v40  ;;  %vm628_vm3 = vcmp.gt.f32.partialorder %v621_v41, 0.0  ;;  %4688 = vmatpush3.msra.mxu0 %v683_v28  ;;  %v684_v43 = vld [vmem:[%s6497_s4 + $0x60] sm:$0xff] }
 0x10c   : > { %5220 = vpow2.f32 %v638_v42  ;;  %v685_v42 = vld [vmem:[%s6497_s4 + $0x68] sm:$0xff] }
 0x10d   : > { %v642_v47 = vmul.f32 1.442695, %v633_v45 }
 0x10f   : > { %5222 = vpow2.f32 %v642_v47  ;;  %v690_v47 = vld [vmem:[%s6497_s4 + $0x90] sm:$0xff] }
 0x110   : > { %5224 = vpow2.f32 %v636_v46 }
 0x111   : > { %5226 = vpow2.f32 %v634_v48  ;;  %v689_v48 = vld [vmem:[%s6497_s4 + $0x88] sm:$0xff] }
 0x118   : > { %v5219_v49 = vpop.eup %5218 }
 0x119   : > { %v5221_v50 = vpop.eup %5220  ;;  %v4207_v52 = vadd.f32 -1.0, %v5219_v49  ;;  %v688_v49 = vld [vmem:[%s6497_s4 + $0x80] sm:$0xff] }
 0x11a   : > { %v4206_v55 = vadd.f32 -1.0, %v5221_v50  ;;  %v695_v50 = vld [vmem:[%s6497_s4 + $0xb8] sm:$0xff] }
 0x11b   : > { %v5524_v59 = vsel %vm627_vm4, %v616_v33, %v4207_v52 }
 0x11c   : > { %v5223_v51 = vpop.eup %5222  ;;  %v5529_v61 = vsel %vm626_vm5, %v611_v29, %v4206_v55  ;;  %v682_v29 = vld [vmem:[%s6497_s4 + $0x50] sm:$0xff]  ;;  %v692_v55 = vld [vmem:[%s6497_s4 + $0xa0] sm:$0xff] }
 0x11d   : > { %v4208_v53 = vadd.f32 -1.0, %v5223_v51  ;;  %v5225_v54 = vpop.eup %5224  ;;  %4689 = vmatprep.subr.mxu0 %v682_v29 }
 0x11e   : > { %v5227_v57 = vpop.eup %5226  ;;  %v4205_v58 = vadd.f32 -1.0, %v5225_v54  ;;  %4690 = vmatpush3.msra.mxu0 %v682_v29  ;;  %v693_v54 = vld [vmem:[%s6497_s4 + $0xa8] sm:$0xff] }
 0x11f   : > { %v5520_v56 = vsel %vm628_vm3, %v621_v41, %v4208_v53  ;;  %v4204_v60 = vadd.f32 -1.0, %v5227_v57  ;;  %4691 = vmatprep.subr.mxu0 %v681_v30  ;;  %v686_v41 = vld [vmem:[%s6497_s4 + $0x70] sm:$0xff] }
 0x120   : > { %4626 = vmatprep.subr.msk.mxu1 %vm716_vm2, %v5520_v56  ;;  %v5533_v62 = vsel %vm625_vm6, %v606_v32, %v4205_v58  ;;  %4692 = vmatpush3.msra.mxu0 %v681_v30  ;;  %v687_v32 = vld [vmem:[%s6497_s4 + $0x78] sm:$0xff]  ;;  %v694_v53 = vld [vmem:[%s6497_s4 + $0xb0] sm:$0xff] }
 0x121   : > { %4627 = vmatpush3.msk.msra.mxu1 %vm716_vm2, %v5520_v56  ;;  %v5537_v63 = vsel %vm624_vm7, %v601_v36, %v4204_v60  ;;  %4693 = vmatprep.subr.mxu0 %v680_v31  ;;  %v666_v60 = vld [vmem:[%s6496_s3 + $0x60] sm:$0xff] }
 0x122   : > { %4628 = vmatprep.subr.mxu1 %v5524_v59  ;;  %4694 = vmatpush3.msra.mxu0 %v680_v31 }
 0x123   : > { %4629 = vmatpush3.msra.mxu1 %v5524_v59  ;;  %4711 = vmatprep.subr.mxu0 %v687_v32 }
 0x124   : > { %4630 = vmatprep.subr.mxu1 %v5529_v61 }
 0x125   : > { %4631 = vmatpush3.msra.mxu1 %v5529_v61 }
 0x126   : > { %4632 = vmatprep.subr.mxu1 %v5533_v62 }
 0x127   : > { %4633 = vmatpush3.msra.mxu1 %v5533_v62 }
 0x128   : > { %4634 = vmatprep.subr.mxu1 %v5537_v63 }
 0x129   : > { %4635 = vmatpush3.msra.mxu1 %v5537_v63 }
 0x12a   : > { %4637 = vmatmul.mubr.msk.f32.vlgmr.msra.gmra.mxu1 %vm709_vm1, %v655_v0  ;;  %4639 = vmatprep.subr.msk.mxu1 %vm716_vm2, %v5520_v56  ;;  %v667_v0 = vld [vmem:[%s6496_s3 + $0x68] sm:$0xff] }
 0x12b   : > { %4640 = vmatpush3.msk.msra.mxu1 %vm716_vm2, %v5520_v56  ;;  %4649 = vmatprep.mubr.msk.f32.mxu1 %vm709_vm1, %v656_v2  ;;  %v703_v2 = vld [vmem:[%s6497_s4 + $0xf8] sm:$0xff] }
 0x12c   : > { %4641 = vmatprep.subr.mxu1 %v5524_v59 }
 0x12d   : > { %4642 = vmatpush3.msra.mxu1 %v5524_v59 }
 0x12e   : > { %4643 = vmatprep.subr.mxu1 %v5529_v61 }
 0x12f   : > { %4644 = vmatpush3.msra.mxu1 %v5529_v61 }
 0x130   : > { %4645 = vmatprep.subr.mxu1 %v5533_v62 }
 0x131   : > { %4646 = vmatpush3.msra.mxu1 %v5533_v62 }
 0x132   : > { %4647 = vmatprep.subr.mxu1 %v5537_v63 }
 0x133   : > { %4648 = vmatpush3.msra.mxu1 %v5537_v63 }
 0x134   : > { %4650 = vmatmul.mubr.msk.f32.vlgmr.msra.gmra.mxu1 %vm709_vm1, %v657_v3  ;;  %4652 = vmatprep.subr.mxu1 %v679_v4  ;;  %v702_v3 = vld [vmem:[%s6497_s4 + $0xf0] sm:$0xff] }
 0x135   : > { %4653 = vmatpush3.msra.mxu1 %v679_v4  ;;  %v701_v4 = vld [vmem:[%s6497_s4 + $0xe8] sm:$0xff] }
 0x136   : > { %4654 = vmatprep.subr.mxu1 %v678_v5 }
 0x137   : > { %4655 = vmatpush3.msra.mxu1 %v678_v5  ;;  %v700_v5 = vld [vmem:[%s6497_s4 + $0xe0] sm:$0xff] }
 0x138   : > { %4656 = vmatprep.subr.mxu1 %v677_v6 }
 0x139   : > { %4657 = vmatpush3.msra.mxu1 %v677_v6 }
 0x13a   : > { %4658 = vmatprep.subr.mxu1 %v676_v7 }
 0x13b   : > { %4659 = vmatpush3.msra.mxu1 %v676_v7 }
 0x13c   : > { %4663 = vmatprep.subr.mxu1 %v675_v8 }
 0x1ea   : > { %v4638_v9 = vpop.f32.mrf.mxu1 }
 0x1ec   : > { %v786_v10 = vpop.f32.mrf.mxu1 }
 0x1f4   : > { %v4651_v11 = vpop.f32.mrf.mxu1 }
 0x1f6   : > { %v867_v12 = vpop.f32.mrf.mxu1 }
 0x1f7   : > { %4660 = vmatprep.mubr.msk.f32.mxu1 %vm876_vm8, %v867_v12 }
 0x1f8   : > { %4661 = vmatmul.mubr.msk.f32.vlgmr.msra.gmra.mxu1 %vm876_vm8, %v4651_v11 }
 0x1f9   : > { %4664 = vmatpush3.msra.mxu1 %v675_v8  ;;  %4671 = vmatprep.mubr.msk.f32.mxu1 %vm876_vm8, %v786_v10 }
 0x1fa   : > { %4665 = vmatprep.subr.mxu1 %v674_v13 }
 0x1fb   : > { %4666 = vmatpush3.msra.mxu1 %v674_v13 }
 0x1fc   : > { %4667 = vmatprep.subr.mxu1 %v673_v14 }
 0x1fd   : > { %4668 = vmatpush3.msra.mxu1 %v673_v14 }
 0x1fe   : > { %4669 = vmatprep.subr.mxu1 %v672_v15 }
 0x1ff   : > { %4670 = vmatpush3.msra.mxu1 %v672_v15 }
 0x200   : > { %4672 = vmatmul.mubr.msk.f32.vlgmr.msra.gmra.mxu1 %vm876_vm8, %v4638_v9  ;;  %4674 = vmatprep.subr.msk.mxu1 %vm716_vm2, %v5520_v56 }
 0x201   : > { %4675 = vmatpush3.msk.msra.mxu1 %vm716_vm2, %v5520_v56  ;;  %4684 = vmatprep.mubr.msk.f32.mxu1 %vm709_vm1, %v658_v16 }
 0x202   : > { %4676 = vmatprep.subr.mxu1 %v5524_v59 }
 0x203   : > { %4677 = vmatpush3.msra.mxu1 %v5524_v59 }
 0x204   : > { %4678 = vmatprep.subr.mxu1 %v5529_v61 }
 0x205   : > { %4679 = vmatpush3.msra.mxu1 %v5529_v61 }
 0x206   : > { %4680 = vmatprep.subr.mxu1 %v5533_v62 }
 0x207   : > { %4681 = vmatpush3.msra.mxu1 %v5533_v62 }
 0x208   : > { %4682 = vmatprep.subr.mxu1 %v5537_v63 }
 0x209   : > { %4683 = vmatpush3.msra.mxu1 %v5537_v63 }
 0x20a   : > { %4685 = vmatmul.mubr.msk.f32.vlgmr.msra.gmra.mxu1 %vm709_vm1, %v659_v17  ;;  %4698 = vmatprep.subr.msk.mxu1 %vm716_vm2, %v5520_v56 }
 0x20b   : > { %4699 = vmatpush3.msk.msra.mxu1 %vm716_vm2, %v5520_v56  ;;  %4708 = vmatprep.mubr.msk.f32.mxu1 %vm709_vm1, %v660_v18 }
 0x20c   : > { %4700 = vmatprep.subr.mxu1 %v5524_v59 }
 0x20d   : > { %4701 = vmatpush3.msra.mxu1 %v5524_v59 }
 0x20e   : > { %4702 = vmatprep.subr.mxu1 %v5529_v61 }
 0x20f   : > { %4703 = vmatpush3.msra.mxu1 %v5529_v61 }
 0x210   : > { %4704 = vmatprep.subr.mxu1 %v5533_v62 }
 0x211   : > { %4705 = vmatpush3.msra.mxu1 %v5533_v62 }
 0x212   : > { %4706 = vmatprep.subr.mxu1 %v5537_v63 }
 0x213   : > { %4707 = vmatpush3.msra.mxu1 %v5537_v63 }
 0x214   : > { %4709 = vmatmul.mubr.msk.f32.vlgmr.msra.gmra.mxu1 %vm709_vm1, %v661_v19  ;;  %4722 = vmatprep.subr.msk.mxu1 %vm716_vm2, %v5520_v56 }
 0x215   : > { %4723 = vmatpush3.msk.msra.mxu1 %vm716_vm2, %v5520_v56  ;;  %4732 = vmatprep.mubr.msk.f32.mxu1 %vm709_vm1, %v662_v20 }
 0x216   : > { %4724 = vmatprep.subr.mxu1 %v5524_v59 }
 0x217   : > { %4725 = vmatpush3.msra.mxu1 %v5524_v59 }
 0x218   : > { %4726 = vmatprep.subr.mxu1 %v5529_v61 }
 0x219   : > { %4727 = vmatpush3.msra.mxu1 %v5529_v61 }
 0x21a   : > { %4728 = vmatprep.subr.mxu1 %v5533_v62 }
 0x21b   : > { %4729 = vmatpush3.msra.mxu1 %v5533_v62 }
 0x21c   : > { %4730 = vmatprep.subr.mxu1 %v5537_v63 }
 0x21d   : > { %4731 = vmatpush3.msra.mxu1 %v5537_v63 }
 0x21e   : > { %4733 = vmatmul.mubr.msk.f32.vlgmr.msra.gmra.mxu1 %vm709_vm1, %v663_v21  ;;  %4746 = vmatprep.subr.msk.mxu1 %vm716_vm2, %v5520_v56 }
 0x21f   : > { %4747 = vmatpush3.msk.msra.mxu1 %vm716_vm2, %v5520_v56  ;;  %4756 = vmatprep.mubr.msk.f32.mxu1 %vm709_vm1, %v664_v22 }
 0x220   : > { %4748 = vmatprep.subr.mxu1 %v5524_v59 }
 0x221   : > { %4749 = vmatpush3.msra.mxu1 %v5524_v59 }
 0x222   : > { %4750 = vmatprep.subr.mxu1 %v5529_v61 }
 0x223   : > { %4751 = vmatpush3.msra.mxu1 %v5529_v61 }
 0x224   : > { %4752 = vmatprep.subr.mxu1 %v5533_v62 }
 0x225   : > { %4753 = vmatpush3.msra.mxu1 %v5533_v62 }
 0x226   : > { %4754 = vmatprep.subr.mxu1 %v5537_v63 }
 0x227   : > { %4755 = vmatpush3.msra.mxu1 %v5537_v63 }
 0x228   : > { %4757 = vmatmul.mubr.msk.f32.vlgmr.msra.gmra.mxu1 %vm709_vm1, %v665_v23  ;;  %4783 = vmatprep.subr.mxu1 %v699_v24 }
 0x229   : > { %4784 = vmatpush3.msra.mxu1 %v699_v24  ;;  %v668_v24 = vld [vmem:[%s6496_s3 + $0x70] sm:$0xff] }
 0x22a   : > { %4785 = vmatprep.subr.mxu1 %v698_v25 }
 0x22b   : > { %4786 = vmatpush3.msra.mxu1 %v698_v25  ;;  %v669_v25 = vld [vmem:[%s6496_s3 + $0x78] sm:$0xff] }
 0x22c   : > { %4787 = vmatprep.subr.mxu1 %v697_v26 }
 0x22d   : > { %4788 = vmatpush3.msra.mxu1 %v697_v26 }
 0x22e   : > { %4789 = vmatprep.subr.mxu1 %v696_v27 }
 0x22f   : > { %4790 = vmatpush3.msra.mxu1 %v696_v27 }
 0x230   : > { %4794 = vmatprep.subr.msk.mxu1 %vm716_vm2, %v5520_v56 }
 0x2b8   : > { %v4662_v33 = vpop.f32.mrf.mxu1 }
 0x2ba   : > { %v949_v34 = vpop.f32.mrf.mxu1 }
 0x2c0   : > { %v4673_v35 = vpop.f32.mrf.mxu1 }
 0x2c1   : > { %v5703_v36 = vadd.f32 %v4673_v35, %v4662_v33  ;;  %v671_v33 = vld [vmem:[%s6496_s3 + $0x88] sm:$0xff] }
 0x2c2   : > { %v1030_v37 = vpop.f32.mrf.mxu1 }
 0x2c3   : > { %v5705_v38 = vadd.f32 %v1030_v37, %v949_v34 }
 0x2ca   : > { %v4686_v39 = vpop.f32.mrf.mxu1 }
 0x2cc   : > { %v1111_v40 = vpop.f32.mrf.mxu1 }
 0x2cd   : > { %4695 = vmatprep.mubr.msk.f32.mxu0 %vm876_vm8, %v1111_v40 }
 0x2ce   : > { %4696 = vmatmul.mubr.msk.f32.vlgmr.msra.gmra.mxu0 %vm876_vm8, %v4686_v39  ;;  %v4254_v39 = vld [vmem:[%s6498_s5] ss:$0 sm:$0xff] }
 0x2cf   : > { %4712 = vmatpush3.msra.mxu0 %v687_v32  ;;  %v670_v32 = vld [vmem:[%s6496_s3 + $0x80] sm:$0xff] }
 0x2d0   : > { %4713 = vmatprep.subr.mxu0 %v686_v41 }
 0x2d1   : > { %4714 = vmatpush3.msra.mxu0 %v686_v41 }
 0x2d2   : > { %4715 = vmatprep.subr.mxu0 %v685_v42 }
 0x2d3   : > { %4716 = vmatpush3.msra.mxu0 %v685_v42 }
 0x2d4   : > { %v4710_v45 = vpop.f32.mrf.mxu1  ;;  %4717 = vmatprep.subr.mxu0 %v684_v43 }
 0x2d5   : > { %4718 = vmatpush3.msra.mxu0 %v684_v43 }
 0x2d6   : > { %v1275_v46 = vpop.f32.mrf.mxu1  ;;  %4735 = vmatprep.subr.mxu0 %v691_v44 }
 0x2d7   : > { %4719 = vmatprep.mubr.msk.f32.mxu0 %vm876_vm8, %v1275_v46 }
 0x2d8   : > { %4720 = vmatmul.mubr.msk.f32.vlgmr.msra.gmra.mxu0 %vm876_vm8, %v4710_v45 }
 0x2d9   : > { %4736 = vmatpush3.msra.mxu0 %v691_v44 }
 0x2da   : > { %4737 = vmatprep.subr.mxu0 %v690_v47 }
 0x2db   : > { %4738 = vmatpush3.msra.mxu0 %v690_v47 }
 0x2dc   : > { %4739 = vmatprep.subr.mxu0 %v689_v48 }
 0x2dd   : > { %4740 = vmatpush3.msra.mxu0 %v689_v48 }
 0x2de   : > { %v4734_v51 = vpop.f32.mrf.mxu1  ;;  %4741 = vmatprep.subr.mxu0 %v688_v49 }
 0x2df   : > { %4742 = vmatpush3.msra.mxu0 %v688_v49 }
 0x2e0   : > { %v1439_v52 = vpop.f32.mrf.mxu1  ;;  %4759 = vmatprep.subr.mxu0 %v695_v50 }
 0x2e1   : > { %4743 = vmatprep.mubr.msk.f32.mxu0 %vm876_vm8, %v1439_v52 }
 0x2e2   : > { %4744 = vmatmul.mubr.msk.f32.vlgmr.msra.gmra.mxu0 %vm876_vm8, %v4734_v51 }
 0x2e3   : > { %4760 = vmatpush3.msra.mxu0 %v695_v50 }
 0x2e4   : > { %4761 = vmatprep.subr.mxu0 %v694_v53 }
 0x2e5   : > { %4762 = vmatpush3.msra.mxu0 %v694_v53 }
 0x2e6   : > { %4763 = vmatprep.subr.mxu0 %v693_v54 }
 0x2e7   : > { %4764 = vmatpush3.msra.mxu0 %v693_v54 }
 0x2e8   : > { %4765 = vmatprep.subr.mxu0 %v692_v55  ;;  %v4758_v57 = vpop.f32.mrf.mxu1 }
 0x2e9   : > { %4766 = vmatpush3.msra.mxu0 %v692_v55  ;;  %v2208_v55 = vld [vmem:[%s6499_s6 + $0x4] sm:$0xf] }
 0x2ea   : > { %4770 = vmatprep.subr.msk.mxu0 %vm716_vm2, %v5520_v56  ;;  %v1603_v58 = vpop.f32.mrf.mxu1 }
 0x2eb   : > { %4767 = vmatprep.mubr.msk.f32.mxu0 %vm876_vm8, %v1603_v58 }
 0x2ec   : > { %4768 = vmatmul.mubr.msk.f32.vlgmr.msra.gmra.mxu0 %vm876_vm8, %v4758_v57  ;;  %v2207_v57 = vld [vmem:[%s6499_s6] sm:$0xf] }
 0x2ed   : > { %4771 = vmatpush3.msk.msra.mxu0 %vm716_vm2, %v5520_v56  ;;  %4780 = vmatprep.mubr.msk.f32.mxu0 %vm709_vm1, %v666_v60  ;;  %v2231_v60 = vld [vmem:[%s6500_s7 + $0x78] sm:$0xff] }
 0x2ee   : > { %4772 = vmatprep.subr.mxu0 %v5524_v59 }
 0x2ef   : > { %4773 = vmatpush3.msra.mxu0 %v5524_v59 }
 0x2f0   : > { %4774 = vmatprep.subr.mxu0 %v5529_v61 }
 0x2f1   : > { %4775 = vmatpush3.msra.mxu0 %v5529_v61 }
 0x2f2   : > { %4776 = vmatprep.subr.mxu0 %v5533_v62 }
 0x2f3   : > { %4777 = vmatpush3.msra.mxu0 %v5533_v62 }
 0x2f4   : > { %4778 = vmatprep.subr.mxu0 %v5537_v63 }
 0x2f5   : > { %4779 = vmatpush3.msra.mxu0 %v5537_v63 }
 0x2f6   : > { %4781 = vmatmul.mubr.msk.f32.vlgmr.msra.gmra.mxu0 %vm709_vm1, %v667_v0  ;;  %4807 = vmatprep.subr.mxu0 %v703_v2  ;;  %v2223_v0 = vld [vmem:[%s6500_s7 + $0x38] sm:$0xff] }
 0x2f7   : > { %4808 = vmatpush3.msra.mxu0 %v703_v2  ;;  %v2230_v2 = vld [vmem:[%s6500_s7 + $0x70] sm:$0xff] }
 0x2f8   : > { %4809 = vmatprep.subr.mxu0 %v702_v3 }
 0x2f9   : > { %4810 = vmatpush3.msra.mxu0 %v702_v3  ;;  %v2222_v3 = vld [vmem:[%s6500_s7 + $0x30] sm:$0xff] }
 0x2fa   : > { %4811 = vmatprep.subr.mxu0 %v701_v4 }
 0x2fb   : > { %4812 = vmatpush3.msra.mxu0 %v701_v4  ;;  %v2229_v4 = vld [vmem:[%s6500_s7 + $0x68] sm:$0xff] }
 0x2fc   : > { %4813 = vmatprep.subr.mxu0 %v700_v5 }
 0x2fd   : > { %4814 = vmatpush3.msra.mxu0 %v700_v5  ;;  %v2221_v5 = vld [vmem:[%s6500_s7 + $0x28] sm:$0xff] }
 0x2fe   : > { %4818 = vmatprep.subr.msk.mxu0 %vm716_vm2, %v5520_v56 }
 0x38e   : > { %v4697_v6 = vpop.f32.mrf.mxu0 }
 0x38f   : > { %v1202_v7 = vadd.f32 %v4697_v6, %v5703_v36  ;;  %v2228_v6 = vld [vmem:[%s6500_s7 + $0x60] sm:$0xff] }
 0x390   : > { %v1192_v8 = vpop.f32.mrf.mxu0 }
 0x391   : > { %v1201_v9 = vadd.f32 %v1192_v8, %v5705_v38  ;;  %v2227_v8 = vld [vmem:[%s6500_s7 + $0x58] sm:$0xff] }
 0x398   : > { %v4721_v10 = vpop.f32.mrf.mxu0 }
 0x399   : > { %v1366_v11 = vadd.f32 %v4721_v10, %v1202_v7  ;;  %v2220_v7 = vld [vmem:[%s6500_s7 + $0x20] sm:$0xff]  ;;  %v2226_v10 = vld [vmem:[%s6500_s7 + $0x50] sm:$0xff] }
 0x39a   : > { %v1356_v12 = vpop.f32.mrf.mxu0 }
 0x39b   : > { %v1365_v13 = vadd.f32 %v1356_v12, %v1201_v9  ;;  %v2219_v9 = vld [vmem:[%s6500_s7 + $0x18] sm:$0xff]  ;;  %v2225_v12 = vld [vmem:[%s6500_s7 + $0x48] sm:$0xff] }
 0x3a2   : > { %v4745_v14 = vpop.f32.mrf.mxu0 }
 0x3a3   : > { %v1530_v15 = vadd.f32 %v4745_v14, %v1366_v11  ;;  %v2218_v11 = vld [vmem:[%s6500_s7 + $0x10] sm:$0xff]  ;;  %v2224_v14 = vld [vmem:[%s6500_s7 + $0x40] sm:$0xff] }
 0x3a4   : > { %v1520_v16 = vpop.f32.mrf.mxu0 }
 0x3a5   : > { %v1529_v17 = vadd.f32 %v1520_v16, %v1365_v13  ;;  %v2217_v13 = vld [vmem:[%s6500_s7 + $0x8] sm:$0xff] }
 0x3ac   : > { %v4769_v18 = vpop.f32.mrf.mxu0 }
 0x3ad   : > { %v1694_v19 = vadd.f32 %v4769_v18, %v1530_v15  ;;  %v2216_v15 = vld [vmem:[%s6500_s7] sm:$0xff]  ;;  %v2239_v18 = vld [vmem:[%s6500_s7 + $0xb8] sm:$0xff] }
 0x3ae   : > { %v1684_v20 = vpop.f32.mrf.mxu0 }
 0x3af   : > { %v1693_v21 = vadd.f32 %v1684_v20, %v1529_v17  ;;  %v2209_v20 = vld [vmem:[%s6499_s6 + $0x8] sm:$0xf] }
 0x3b6   : > { %v4782_v22 = vpop.f32.mrf.mxu0 }
 0x3b8   : > { %v1767_v23 = vpop.f32.mrf.mxu0 }
 0x3b9   : > { %4791 = vmatprep.mubr.msk.f32.mxu1 %vm876_vm8, %v1767_v23  ;;  %v2210_v23 = vld [vmem:[%s6499_s6 + $0xc] sm:$0xf] }
 0x3ba   : > { %4792 = vmatmul.mubr.msk.f32.vlgmr.msra.gmra.mxu1 %vm876_vm8, %v4782_v22  ;;  %v2238_v22 = vld [vmem:[%s6500_s7 + $0xb0] sm:$0xff] }
 0x3bb   : > { %4795 = vmatpush3.msk.msra.mxu1 %vm716_vm2, %v5520_v56  ;;  %4804 = vmatprep.mubr.msk.f32.mxu1 %vm709_vm1, %v668_v24  ;;  %v2237_v24 = vld [vmem:[%s6500_s7 + $0xa8] sm:$0xff] }
 0x3bc   : > { %4796 = vmatprep.subr.mxu1 %v5524_v59 }
 0x3bd   : > { %4797 = vmatpush3.msra.mxu1 %v5524_v59 }
 0x3be   : > { %4798 = vmatprep.subr.mxu1 %v5529_v61 }
 0x3bf   : > { %4799 = vmatpush3.msra.mxu1 %v5529_v61 }
 0x3c0   : > { %4800 = vmatprep.subr.mxu1 %v5533_v62 }
 0x3c1   : > { %4801 = vmatpush3.msra.mxu1 %v5533_v62 }
 0x3c2   : > { %4802 = vmatprep.subr.mxu1 %v5537_v63 }
 0x3c3   : > { %4803 = vmatpush3.msra.mxu1 %v5537_v63 }
 0x3c4   : > { %4805 = vmatmul.mubr.msk.f32.vlgmr.msra.gmra.mxu1 %vm709_vm1, %v669_v25  ;;  %v2247_v25 = vld [vmem:[%s6500_s7 + $0xf8] sm:$0xff] }
 0x47a   : > { %v4793_v26 = vpop.f32.mrf.mxu1 }
 0x47b   : > { %v1858_v27 = vadd.f32 %v4793_v26, %v1694_v19  ;;  %v2236_v26 = vld [vmem:[%s6500_s7 + $0xa0] sm:$0xff] }
 0x47c   : > { %v1848_v28 = vpop.f32.mrf.mxu1 }
 0x47d   : > { %v1857_v29 = vadd.f32 %v1848_v28, %v1693_v21  ;;  %v2235_v28 = vld [vmem:[%s6500_s7 + $0x98] sm:$0xff] }
 0x484   : > { %v4806_v30 = vpop.f32.mrf.mxu1 }
 0x486   : > { %v1931_v31 = vpop.f32.mrf.mxu1 }
 0x487   : > { %4815 = vmatprep.mubr.msk.f32.mxu0 %vm876_vm8, %v1931_v31  ;;  %v2244_v31 = vld [vmem:[%s6500_s7 + $0xe0] sm:$0xff] }
 0x488   : > { %4816 = vmatmul.mubr.msk.f32.vlgmr.msra.gmra.mxu0 %vm876_vm8, %v4806_v30  ;;  %v2234_v30 = vld [vmem:[%s6500_s7 + $0x90] sm:$0xff] }
 0x489   : > { %4819 = vmatpush3.msk.msra.mxu0 %vm716_vm2, %v5520_v56  ;;  %4828 = vmatprep.mubr.msk.f32.mxu0 %vm709_vm1, %v670_v32  ;;  %v707_v56 = vld [vmem:[%s6497_s4 + $0x118] sm:$0xff]  ;;  %v2233_v32 = vld [vmem:[%s6500_s7 + $0x88] sm:$0xff] }
 0x48a   : > { %4820 = vmatprep.subr.mxu0 %v5524_v59  ;;  %4831 = vmatprep.subr.mxu1 %v707_v56 }
 0x48b   : > { %4821 = vmatpush3.msra.mxu0 %v5524_v59  ;;  %v706_v59 = vld [vmem:[%s6497_s4 + $0x110] sm:$0xff]  ;;  %4832 = vmatpush3.msra.mxu1 %v707_v56  ;;  %v2232_v56 = vld [vmem:[%s6500_s7 + $0x80] sm:$0xff] }
 0x48c   : > { %4822 = vmatprep.subr.mxu0 %v5529_v61  ;;  %4833 = vmatprep.subr.mxu1 %v706_v59 }
 0x48d   : > { %4823 = vmatpush3.msra.mxu0 %v5529_v61  ;;  %4834 = vmatpush3.msra.mxu1 %v706_v59  ;;  %v705_v61 = vld [vmem:[%s6497_s4 + $0x108] sm:$0xff]  ;;  %v2242_v59 = vld [vmem:[%s6500_s7 + $0xd0] sm:$0xff] }
 0x48e   : > { %4824 = vmatprep.subr.mxu0 %v5533_v62  ;;  %4835 = vmatprep.subr.mxu1 %v705_v61 }
 0x48f   : > { %4825 = vmatpush3.msra.mxu0 %v5533_v62  ;;  %4836 = vmatpush3.msra.mxu1 %v705_v61  ;;  %v704_v62 = vld [vmem:[%s6497_s4 + $0x100] sm:$0xff]  ;;  %v2241_v61 = vld [vmem:[%s6500_s7 + $0xc8] sm:$0xff] }
 0x490   : > { %4826 = vmatprep.subr.mxu0 %v5537_v63  ;;  %4837 = vmatprep.subr.mxu1 %v704_v62 }
 0x491   : > { %4827 = vmatpush3.msra.mxu0 %v5537_v63  ;;  %4838 = vmatpush3.msra.mxu1 %v704_v62  ;;  %v2240_v62 = vld [vmem:[%s6500_s7 + $0xc0] sm:$0xff] }
 0x492   : > { %4829 = vmatmul.mubr.msk.f32.vlgmr.msra.gmra.mxu0 %vm709_vm1, %v671_v33  ;;  %4849 = vmatprep.subr.mxu0 %v5300_v1  ;;  %v2243_v33 = vld [vmem:[%s6500_s7 + $0xd8] sm:$0xff] }
 0x493   : > { %4853 = vmatprep.mubr.msk.f32.mxu0 %vm5301_vm0, %v5300_v1  ;;  %4842 = vmatprep.subr.mxu1 %v5300_v1 }
 0x548   : > { %v4817_v63 = vpop.f32.mrf.mxu0 }
 0x549   : > { %v2022_v34 = vadd.f32 %v4817_v63, %v1858_v27  ;;  %v2246_v27 = vld [vmem:[%s6500_s7 + $0xf0] sm:$0xff] }
 0x54a   : > { %v2012_v35 = vpop.f32.mrf.mxu0 }
 0x54b   : > { %v2021_v36 = vadd.f32 %v2012_v35, %v1857_v29  ;;  %v2245_v29 = vld [vmem:[%s6500_s7 + $0xe8] sm:$0xff] }
 0x552   : > { %v4830_v37 = vpop.f32.mrf.mxu0 }
 0x554   : > { %v2095_v38 = vpop.f32.mrf.mxu0 }
 0x555   : > { %4839 = vmatprep.mubr.msk.f32.mxu1 %vm876_vm8, %v2095_v38 }
 0x556   : > { %4840 = vmatmul.mubr.msk.f32.vlgmr.msra.gmra.mxu1 %vm876_vm8, %v4830_v37 }
 0x557   : > { %4846 = vmatprep.mubr.msk.f32.mxu1 %vm5301_vm0, %v5300_v1 }
 0x616   : > { %v4841_v40 = vpop.f32.mrf.mxu1 }
 0x617   : > { %v2186_v41 = vadd.f32 %v4841_v40, %v2022_v34  ;;  %v2211_v40 = vld [vmem:[%s6499_s6 + $0x10] sm:$0xf] }
 0x618   : > { %v2176_v42 = vpop.f32.mrf.mxu1 }
 0x619   : > { %v2194_v43 = vadd.f32 %v4254_v39, %v2186_v41  ;;  %v2185_v44 = vadd.f32 %v2176_v42, %v2021_v36  ;;  %v2255_v42 = vld [vmem:[%s6500_s7 + $0x138] sm:$0xff] }
 0x61b   : > { %v2198_v45 = vmin.f32 %v2194_v43, 0.0  ;;  %v2193_v46 = vadd.f32 %v4254_v39, %v2185_v44  ;;  %vm2196_vm9 = vcmp.gt.f32.partialorder %v2194_v43, 0.0 }
 0x61d   : > { %v2201_v47 = vmul.f32 1.442695, %v2198_v45  ;;  %v2197_v48 = vmin.f32 %v2193_v46, 0.0  ;;  %vm2195_vm10 = vcmp.gt.f32.partialorder %v2193_v46, 0.0  ;;  %v2254_v45 = vld [vmem:[%s6500_s7 + $0x130] sm:$0xff] }
 0x61f   : > { %5228 = vpow2.f32 %v2201_v47  ;;  %v2199_v49 = vmul.f32 1.442695, %v2197_v48  ;;  %v2253_v47 = vld [vmem:[%s6500_s7 + $0x128] sm:$0xff]  ;;  %v2262_v48 = vld [vmem:[%s6500_s7 + $0x170] sm:$0xff] }
 0x621   : > { %5230 = vpow2.f32 %v2199_v49  ;;  %v2252_v49 = vld [vmem:[%s6500_s7 + $0x120] sm:$0xff] }
 0x62c   : > { %v5229_v50 = vpop.eup %5228 }
 0x62d   : > { %v4256_v51 = vadd.f32 -1.0, %v5229_v50  ;;  %v2261_v50 = vld [vmem:[%s6500_s7 + $0x168] sm:$0xff] }
 0x62e   : > { %v5231_v52 = vpop.eup %5230 }
 0x62f   : > { %v5847_v53 = vsel %vm2196_vm9, %v2194_v43, %v4256_v51  ;;  %v4255_v54 = vadd.f32 -1.0, %v5231_v52  ;;  %v2212_v43 = vld [vmem:[%s6499_s6 + $0x14] sm:$0xf]  ;;  %v2251_v51 = vld [vmem:[%s6500_s7 + $0x118] sm:$0xff]  ;;  %v2260_v52 = vld [vmem:[%s6500_s7 + $0x160] sm:$0xff] }
 0x630   : > { %4843 = vmatpush3.msra.mxu1 %v5847_v53  ;;  %4850 = vmatpush3.msra.mxu0 %v5847_v53 }
 0x631   : > { %v5857_v58 = vsel %vm2195_vm10, %v2193_v46, %v4255_v54  ;;  %4844 = vmatprep.subr.mxu1 %v5300_v1  ;;  %4851 = vmatprep.subr.mxu0 %v5300_v1  ;;  %v2263_v46 = vld [vmem:[%s6500_s7 + $0x178] sm:$0xff]  ;;  %v2250_v54 = vld [vmem:[%s6500_s7 + $0x110] sm:$0xff] }
 0x632   : > { %4845 = vmatpush3.msra.mxu1 %v5857_v58  ;;  %4852 = vmatpush3.msra.mxu0 %v5857_v58 }
 0x633   : > { %4854 = vmatmul.mubr.msk.f32.vlgmr.msra.gmra.mxu0 %vm2289_vm11, %v2208_v55  ;;  %4847 = vmatmul.mubr.msk.f32.vlgmr.msra.gmra.mxu1 %vm2289_vm11, %v2207_v57  ;;  %v2249_v55 = vld [vmem:[%s6500_s7 + $0x108] sm:$0xff]  ;;  %v2259_v57 = vld [vmem:[%s6500_s7 + $0x158] sm:$0xff] }
 0x634   : > { %4856 = vmatprep.subr.mxu1 %v5300_v1  ;;  %4875 = vmatprep.subr.mxu0 %v5300_v1 }
 0x635   : > { %4857 = vmatpush3.msra.mxu1 %v2231_v60  ;;  %4876 = vmatpush3.msra.mxu0 %v2223_v0  ;;  %v2248_v60 = vld [vmem:[%s6500_s7 + $0x100] sm:$0xff]  ;;  %v2258_v0 = vld [vmem:[%s6500_s7 + $0x150] sm:$0xff] }
 0x636   : > { %4858 = vmatprep.subr.mxu1 %v5300_v1  ;;  %4877 = vmatprep.subr.mxu0 %v5300_v1 }
 0x637   : > { %4859 = vmatpush3.msra.mxu1 %v2230_v2  ;;  %4878 = vmatpush3.msra.mxu0 %v2222_v3  ;;  %v2257_v2 = vld [vmem:[%s6500_s7 + $0x148] sm:$0xff]  ;;  %v2256_v3 = vld [vmem:[%s6500_s7 + $0x140] sm:$0xff] }
 0x638   : > { %4860 = vmatprep.subr.mxu1 %v5300_v1  ;;  %4879 = vmatprep.subr.mxu0 %v5300_v1 }
 0x639   : > { %4861 = vmatpush3.msra.mxu1 %v2229_v4  ;;  %4880 = vmatpush3.msra.mxu0 %v2221_v5 }
 0x63a   : > { %4862 = vmatprep.subr.mxu1 %v5300_v1  ;;  %4881 = vmatprep.subr.mxu0 %v5300_v1 }
 0x63b   : > { %4863 = vmatpush3.msra.mxu1 %v2228_v6  ;;  %4882 = vmatpush3.msra.mxu0 %v2220_v7 }
 0x63c   : > { %4864 = vmatprep.subr.mxu1 %v5300_v1  ;;  %4883 = vmatprep.subr.mxu0 %v5300_v1 }
 0x63d   : > { %4865 = vmatpush3.msra.mxu1 %v2227_v8  ;;  %4884 = vmatpush3.msra.mxu0 %v2219_v9 }
 0x63e   : > { %4866 = vmatprep.subr.mxu1 %v5300_v1  ;;  %4885 = vmatprep.subr.mxu0 %v5300_v1 }
 0x63f   : > { %4867 = vmatpush3.msra.mxu1 %v2226_v10  ;;  %4886 = vmatpush3.msra.mxu0 %v2218_v11 }
 0x640   : > { %4868 = vmatprep.subr.mxu1 %v5300_v1  ;;  %4887 = vmatprep.subr.mxu0 %v5300_v1 }
 0x641   : > { %4869 = vmatpush3.msra.mxu1 %v2225_v12  ;;  %4888 = vmatpush3.msra.mxu0 %v2217_v13  ;;  %v2213_v12 = vld [vmem:[%s6499_s6 + $0x18] sm:$0xf] }
 0x642   : > { %4870 = vmatprep.subr.mxu1 %v5300_v1  ;;  %4872 = vmatprep.mubr.msk.f32.mxu1 %vm5301_vm0, %v5300_v1 }
 0x643   : > { %4871 = vmatpush3.msra.mxu1 %v2224_v14  ;;  %4889 = vmatprep.subr.mxu0 %v5300_v1  ;;  %v2271_v14 = vld [vmem:[%s6500_s7 + $0x1b8] sm:$0xff] }
 0x644   : > { %4894 = vmatprep.subr.mxu1 %v5300_v1  ;;  %4891 = vmatprep.mubr.msk.f32.mxu0 %vm5301_vm0, %v5300_v1 }
 0x645   : > { %4890 = vmatpush3.msra.mxu0 %v2216_v15  ;;  %v2214_v15 = vld [vmem:[%s6499_s6 + $0x1c] sm:$0xf] }
 0x646   : > { %4901 = vmatprep.subr.mxu0 %v5300_v1 }
 0x6f3   : > { %v2432_v16 = vpop.f32.mrf.mxu0  ;;  %v2359_v17 = vpop.f32.mrf.mxu1 }
 0x6f4   : > { %4873 = vmatmul.mubr.msk.f32.vlgmr.msra.gmra.mxu1 %vm2436_vm12, %v2432_v16  ;;  %4892 = vmatmul.mubr.msk.f32.vlgmr.msra.gmra.mxu0 %vm2436_vm12, %v2359_v17  ;;  %v2270_v17 = vld [vmem:[%s6500_s7 + $0x1b0] sm:$0xff] }
 0x6f5   : > { %4895 = vmatpush3.msra.mxu1 %v5847_v53  ;;  %v4855_v19 = vpop.f32.mrf.mxu0  ;;  %4898 = vmatprep.mubr.msk.f32.mxu1 %vm5301_vm0, %v5300_v1  ;;  %v4848_v21 = vpop.f32.mrf.mxu1 }
 0x6f6   : > { %4896 = vmatprep.subr.mxu1 %v5300_v1  ;;  %4902 = vmatpush3.msra.mxu0 %v2239_v18  ;;  %v2279_v18 = vld [vmem:[%s6500_s7 + $0x1f8] sm:$0xff]  ;;  %v2269_v19 = vld [vmem:[%s6500_s7 + $0x1a8] sm:$0xff]  ;;  %v2268_v21 = vld [vmem:[%s6500_s7 + $0x1a0] sm:$0xff] }
 0x6f7   : > { %4897 = vmatpush3.msra.mxu1 %v5857_v58  ;;  %4903 = vmatprep.subr.mxu0 %v5300_v1 }
 0x6f8   : > { %4920 = vmatprep.subr.mxu1 %v5300_v1  ;;  %4899 = vmatmul.mubr.msk.f32.vlgmr.msra.gmra.mxu1 %vm2289_vm11, %v2209_v20  ;;  %v2278_v20 = vld [vmem:[%s6500_s7 + $0x1f0] sm:$0xff] }
 0x6f9   : > { %4921 = vmatpush3.msra.mxu1 %v5847_v53  ;;  %4924 = vmatprep.mubr.msk.f32.mxu1 %vm5301_vm0, %v5300_v1 }
 0x6fa   : > { %4922 = vmatprep.subr.mxu1 %v5300_v1  ;;  %4904 = vmatpush3.msra.mxu0 %v2238_v22  ;;  %v2277_v22 = vld [vmem:[%s6500_s7 + $0x1e8] sm:$0xff] }
 0x6fb   : > { %4923 = vmatpush3.msra.mxu1 %v5857_v58  ;;  %4905 = vmatprep.subr.mxu0 %v5300_v1 }
 0x6fc   : > { %4925 = vmatmul.mubr.msk.f32.vlgmr.msra.gmra.mxu1 %vm2289_vm11, %v2210_v23  ;;  %4927 = vmatprep.subr.mxu1 %v5300_v1  ;;  %v2267_v23 = vld [vmem:[%s6500_s7 + $0x198] sm:$0xff] }
 0x6fd   : > { %4906 = vmatpush3.msra.mxu0 %v2237_v24  ;;  %4928 = vmatpush3.msra.mxu1 %v2247_v25  ;;  %v2266_v24 = vld [vmem:[%s6500_s7 + $0x190] sm:$0xff]  ;;  %v2276_v25 = vld [vmem:[%s6500_s7 + $0x1e0] sm:$0xff] }
 0x6fe   : > { %4907 = vmatprep.subr.mxu0 %v5300_v1  ;;  %4929 = vmatprep.subr.mxu1 %v5300_v1 }
 0x6ff   : > { %4908 = vmatpush3.msra.mxu0 %v2236_v26  ;;  %4930 = vmatpush3.msra.mxu1 %v2246_v27  ;;  %v2265_v26 = vld [vmem:[%s6500_s7 + $0x188] sm:$0xff]  ;;  %v2275_v27 = vld [vmem:[%s6500_s7 + $0x1d8] sm:$0xff] }
 0x700   : > { %4909 = vmatprep.subr.mxu0 %v5300_v1  ;;  %4931 = vmatprep.subr.mxu1 %v5300_v1 }
 0x701   : > { %4910 = vmatpush3.msra.mxu0 %v2235_v28  ;;  %4932 = vmatpush3.msra.mxu1 %v2245_v29  ;;  %v2264_v28 = vld [vmem:[%s6500_s7 + $0x180] sm:$0xff]  ;;  %v2274_v29 = vld [vmem:[%s6500_s7 + $0x1d0] sm:$0xff] }
 0x702   : > { %4911 = vmatprep.subr.mxu0 %v5300_v1  ;;  %4933 = vmatprep.subr.mxu1 %v5300_v1 }
 0x703   : > { %4912 = vmatpush3.msra.mxu0 %v2234_v30  ;;  %4934 = vmatpush3.msra.mxu1 %v2244_v31  ;;  %v2273_v30 = vld [vmem:[%s6500_s7 + $0x1c8] sm:$0xff]  ;;  %v2272_v31 = vld [vmem:[%s6500_s7 + $0x1c0] sm:$0xff] }
 0x704   : > { %4913 = vmatprep.subr.mxu0 %v5300_v1  ;;  %4935 = vmatprep.subr.mxu1 %v5300_v1 }
 0x705   : > { %4917 = vmatprep.mubr.msk.f32.mxu0 %vm5301_vm0, %v5300_v1  ;;  %4943 = vmatprep.mubr.msk.f32.mxu1 %vm5301_vm0, %v5300_v1 }
 0x706   : > { %4914 = vmatpush3.msra.mxu0 %v2233_v32  ;;  %4936 = vmatpush3.msra.mxu1 %v2243_v33 }
 0x707   : > { %4915 = vmatprep.subr.mxu0 %v5300_v1  ;;  %4937 = vmatprep.subr.mxu1 %v5300_v1 }
 0x708   : > { %4916 = vmatpush3.msra.mxu0 %v2232_v56  ;;  %4938 = vmatpush3.msra.mxu1 %v2242_v59 }
 0x709   : > { %4939 = vmatprep.subr.mxu1 %v5300_v1  ;;  %4946 = vmatprep.subr.mxu0 %v5300_v1 }
 0x70a   : > { %4940 = vmatpush3.msra.mxu1 %v2241_v61 }
 0x70b   : > { %4941 = vmatprep.subr.mxu1 %v5300_v1 }
 0x70c   : > { %4942 = vmatpush3.msra.mxu1 %v2240_v62 }
 0x70d   : > { %4972 = vmatprep.subr.mxu1 %v5300_v1 }
 0x7b4   : > { %v2506_v63 = vpop.f32.mrf.mxu1  ;;  %v2579_v34 = vpop.f32.mrf.mxu0 }
 0x7b5   : > { %v6025_v35 = vadd.f32 %v2579_v34, %v2506_v63 }
 0x7b6   : > { %v4874_v36 = vpop.f32.mrf.mxu1  ;;  %v4893_v37 = vpop.f32.mrf.mxu0 }
 0x7b7   : > { %v2287_v37 = vld [vmem:[%s6500_s7 + $0x238] sm:$0xff] }
 0x7b8   : > { %v2652_v38 = vpop.f32.mrf.mxu1 }
 0x7b9   : > { %4918 = vmatmul.mubr.msk.f32.vlgmr.msra.gmra.mxu0 %vm2436_vm12, %v2652_v38 }
 0x7ba   : > { %4947 = vmatpush3.msra.mxu0 %v5847_v53  ;;  %v4900_v39 = vpop.f32.mrf.mxu1  ;;  %4950 = vmatprep.mubr.msk.f32.mxu0 %vm5301_vm0, %v5300_v1 }
 0x7bb   : > { %4948 = vmatprep.subr.mxu0 %v5300_v1  ;;  %v2284_v39 = vld [vmem:[%s6500_s7 + $0x220] sm:$0xff] }
 0x7bc   : > { %4949 = vmatpush3.msra.mxu0 %v5857_v58  ;;  %v2799_v41 = vpop.f32.mrf.mxu1 }
 0x7bd   : > { %4944 = vmatmul.mubr.msk.f32.vlgmr.msra.gmra.mxu1 %vm2436_vm12, %v2799_v41  ;;  %4951 = vmatmul.mubr.msk.f32.vlgmr.msra.gmra.mxu0 %vm2289_vm11, %v2211_v40  ;;  %v2283_v40 = vld [vmem:[%s6500_s7 + $0x218] sm:$0xff]  ;;  %v2282_v41 = vld [vmem:[%s6500_s7 + $0x210] sm:$0xff] }
 0x7be   : > { %4973 = vmatpush3.msra.mxu1 %v5847_v53  ;;  %4976 = vmatprep.mubr.msk.f32.mxu1 %vm5301_vm0, %v5300_v1  ;;  %v4926_v44 = vpop.f32.mrf.mxu1 }
 0x7bf   : > { %4974 = vmatprep.subr.mxu1 %v5300_v1  ;;  %4953 = vmatprep.subr.mxu0 %v5300_v1 }
 0x7c0   : > { %4975 = vmatpush3.msra.mxu1 %v5857_v58  ;;  %4954 = vmatpush3.msra.mxu0 %v2255_v42  ;;  %v2281_v42 = vld [vmem:[%s6500_s7 + $0x208] sm:$0xff] }
 0x7c1   : > { %4977 = vmatmul.mubr.msk.f32.vlgmr.msra.gmra.mxu1 %vm2289_vm11, %v2212_v43  ;;  %4955 = vmatprep.subr.mxu0 %v5300_v1  ;;  %v2280_v43 = vld [vmem:[%s6500_s7 + $0x200] sm:$0xff] }
 0x7c2   : > { %4956 = vmatpush3.msra.mxu0 %v2254_v45  ;;  %4979 = vmatprep.subr.mxu1 %v5300_v1 }
 0x7c3   : > { %4957 = vmatprep.subr.mxu0 %v5300_v1  ;;  %4980 = vmatpush3.msra.mxu1 %v2263_v46 }
 0x7c4   : > { %4958 = vmatpush3.msra.mxu0 %v2253_v47  ;;  %4981 = vmatprep.subr.mxu1 %v5300_v1 }
 0x7c5   : > { %4959 = vmatprep.subr.mxu0 %v5300_v1  ;;  %4982 = vmatpush3.msra.mxu1 %v2262_v48 }
 0x7c6   : > { %4960 = vmatpush3.msra.mxu0 %v2252_v49  ;;  %4983 = vmatprep.subr.mxu1 %v5300_v1 }
 0x7c7   : > { %4961 = vmatprep.subr.mxu0 %v5300_v1  ;;  %4984 = vmatpush3.msra.mxu1 %v2261_v50 }
 0x7c8   : > { %4962 = vmatpush3.msra.mxu0 %v2251_v51  ;;  %4985 = vmatprep.subr.mxu1 %v5300_v1 }
 0x7c9   : > { %4963 = vmatprep.subr.mxu0 %v5300_v1  ;;  %4986 = vmatpush3.msra.mxu1 %v2260_v52  ;;  %v3634_v52 = vld [vmem:[%s6502_s9 + $0x38] sm:$0xff] }
 0x7ca   : > { %4964 = vmatpush3.msra.mxu0 %v2250_v54  ;;  %4987 = vmatprep.subr.mxu1 %v5300_v1  ;;  %v3626_v54 = vld [vmem:[%s6504_s11] sm:$0xff] }
 0x7cb   : > { %4965 = vmatprep.subr.mxu0 %v5300_v1  ;;  %4969 = vmatprep.mubr.msk.f32.mxu0 %vm5301_vm0, %v5300_v1 }
 0x7cc   : > { %4995 = vmatprep.mubr.msk.f32.mxu1 %vm5301_vm0, %v5300_v1  ;;  %4966 = vmatpush3.msra.mxu0 %v2249_v55  ;;  %v3633_v55 = vld [vmem:[%s6502_s9 + $0x30] sm:$0xff] }
 0x7cd   : > { %4988 = vmatpush3.msra.mxu1 %v2259_v57  ;;  %4967 = vmatprep.subr.mxu0 %v5300_v1  ;;  %v3625_v57 = vld [vmem:[%s505_s24] sm:$0x1]  ;;  %s497_s24 = scalar_lea.vmem [#allocation2], %s496_s18 }
 0x7ce   : > { %4989 = vmatprep.subr.mxu1 %v5300_v1  ;;  %4968 = vmatpush3.msra.mxu0 %v2248_v60  ;;  %v3650_v60 = vld [vmem:[%s6502_s9 + $0xb8] sm:$0xff]  ;;  %s4134_s29 = sshll.u32 %s497_s24, 4  ;;  %s4135_s29 = int_to_ptr.vmem [resolvable:$true] %s4134_s29 }
 0x7cf   : > { %4990 = vmatpush3.msra.mxu1 %v2258_v0  ;;  %4998 = vmatprep.subr.mxu0 %v5300_v1  ;;  %v3632_v0 = vld [vmem:[%s6502_s9 + $0x28] sm:$0xff]  ;;  %s5238_s26 = scalar_lea.vmem %s4135_s29, 16  ;;  %p5245_p0 = scmp.lt.s32.totalorder %s4135_s29, %s5243_s30 }
 0x7d0   : > { %4991 = vmatprep.subr.mxu1 %v5300_v1  ;;  %p5239_p11 = scmp.ne.s32.totalorder %s4135_s29, %s5238_s26  ;;  %p5246_p1 = scmp.lt.s32.totalorder %s5244_s22, %s5238_s26 }
 0x7d1   : > { %4992 = vmatpush3.msra.mxu1 %v2257_v2  ;;  %v3649_v2 = vld [vmem:[%s6502_s9 + $0xb0] sm:$0xff] }
 0x7d2   : > { %4993 = vmatprep.subr.mxu1 %v5300_v1  ;;  %p5240_p12 = pnand %p5239_p11, %p5421_p5  ;;  %p5247_p2 = por %p5246_p1, %p5245_p0 }
 0x7d3   : > { %4994 = vmatpush3.msra.mxu1 %v2256_v3  ;;  %v3631_v3 = vld [vmem:[%s6502_s9 + $0x20] sm:$0xff] }
 0x7d4   : > { %5024 = vmatprep.subr.mxu1 %v5300_v1  ;;  %p5241_p13 = pneg %p5240_p12 }
 0x7d6   : > { %p5248_p3 = pnand %p5247_p2, %p5241_p13 }
 0x879   : > { %v2725_v4 = vpop.f32.mrf.mxu0 }
 0x87a   : > { %v2729_v5 = vadd.f32 %v2725_v4, %v6025_v35  ;;  %v2215_v35 = vld [vmem:[%s6499_s6 + $0x20] sm:$0xf]  ;;  %v3648_v4 = vld [vmem:[%s6502_s9 + $0xa8] sm:$0xff] }
 0x87b   : > { %v4919_v6 = vpop.f32.mrf.mxu0 }
 0x87c   : > { %v3647_v6 = vld [vmem:[%s6502_s9 + $0xa0] sm:$0xff] }
 0x87d   : > { %v2872_v7 = vpop.f32.mrf.mxu1  ;;  %v2946_v8 = vpop.f32.mrf.mxu0 }
 0x87e   : > { %v6118_v9 = vadd.f32 %v2872_v7, %v2729_v5  ;;  %4970 = vmatmul.mubr.msk.f32.vlgmr.msra.gmra.mxu0 %vm2436_vm12, %v2946_v8  ;;  %v3630_v5 = vld [vmem:[%s6502_s9 + $0x18] sm:$0xff]  ;;  %v3629_v7 = vld [vmem:[%s6502_s9 + $0x10] sm:$0xff] }
 0x87f   : > { %4999 = vmatpush3.msra.mxu0 %v5847_v53  ;;  %v4945_v10 = vpop.f32.mrf.mxu1  ;;  %v4952_v11 = vpop.f32.mrf.mxu0  ;;  %5002 = vmatprep.mubr.msk.f32.mxu0 %vm5301_vm0, %v5300_v1  ;;  %v3646_v8 = vld [vmem:[%s6502_s9 + $0x98] sm:$0xff] }
 0x880   : > { %5000 = vmatprep.subr.mxu0 %v5300_v1  ;;  %v3645_v10 = vld [vmem:[%s6502_s9 + $0x90] sm:$0xff]  ;;  %v3627_v11 = vld [vmem:[%s6502_s9] sm:$0xff] }
 0x881   : > { %5001 = vmatpush3.msra.mxu0 %v5857_v58  ;;  %v3093_v13 = vpop.f32.mrf.mxu1 }
 0x882   : > { %4996 = vmatmul.mubr.msk.f32.vlgmr.msra.gmra.mxu1 %vm2436_vm12, %v3093_v13  ;;  %5003 = vmatmul.mubr.msk.f32.vlgmr.msra.gmra.mxu0 %vm2289_vm11, %v2213_v12  ;;  %v3644_v12 = vld [vmem:[%s6502_s9 + $0x88] sm:$0xff]  ;;  %v3643_v13 = vld [vmem:[%s6502_s9 + $0x80] sm:$0xff] }
 0x883   : > { %5025 = vmatpush3.msra.mxu1 %v5847_v53  ;;  %5028 = vmatprep.mubr.msk.f32.mxu1 %vm5301_vm0, %v5300_v1  ;;  %v4978_v16 = vpop.f32.mrf.mxu1 }
 0x884   : > { %5026 = vmatprep.subr.mxu1 %v5300_v1  ;;  %5005 = vmatprep.subr.mxu0 %v5300_v1 }
 0x885   : > { %5027 = vmatpush3.msra.mxu1 %v5857_v58  ;;  %5006 = vmatpush3.msra.mxu0 %v2271_v14  ;;  %v4275_v14 = vld [vmem:[%s6501_s8] ss:$0 sm:$0xff] }
 0x886   : > { %5029 = vmatmul.mubr.msk.f32.vlgmr.msra.gmra.mxu1 %vm2289_vm11, %v2214_v15  ;;  %5007 = vmatprep.subr.mxu0 %v5300_v1 }
 0x887   : > { %5008 = vmatpush3.msra.mxu0 %v2270_v17  ;;  %5031 = vmatprep.subr.mxu1 %v5300_v1 }
 0x888   : > { %5009 = vmatprep.subr.mxu0 %v5300_v1  ;;  %5032 = vmatpush3.msra.mxu1 %v2279_v18 }
 0x889   : > { %5010 = vmatpush3.msra.mxu0 %v2269_v19  ;;  %5033 = vmatprep.subr.mxu1 %v5300_v1 }
 0x88a   : > { %5011 = vmatprep.subr.mxu0 %v5300_v1  ;;  %5034 = vmatpush3.msra.mxu1 %v2278_v20 }
 0x88b   : > { %5012 = vmatpush3.msra.mxu0 %v2268_v21  ;;  %5035 = vmatprep.subr.mxu1 %v5300_v1 }
 0x88c   : > { %5013 = vmatprep.subr.mxu0 %v5300_v1  ;;  %5036 = vmatpush3.msra.mxu1 %v2277_v22 }
 0x88d   : > { %5014 = vmatpush3.msra.mxu0 %v2267_v23  ;;  %5037 = vmatprep.subr.mxu1 %v5300_v1  ;;  %v3642_v23 = vld [vmem:[%s6502_s9 + $0x78] sm:$0xff] }
 0x88e   : > { %5015 = vmatprep.subr.mxu0 %v5300_v1  ;;  %5021 = vmatprep.mubr.msk.f32.mxu0 %vm5301_vm0, %v5300_v1 }
 0x88f   : > { %5016 = vmatpush3.msra.mxu0 %v2266_v24  ;;  %5047 = vmatprep.mubr.msk.f32.mxu1 %vm5301_vm0, %v5300_v1 }
 0x890   : > { %5017 = vmatprep.subr.mxu0 %v5300_v1  ;;  %5038 = vmatpush3.msra.mxu1 %v2276_v25 }
 0x891   : > { %5018 = vmatpush3.msra.mxu0 %v2265_v26  ;;  %5039 = vmatprep.subr.mxu1 %v5300_v1  ;;  %v3641_v26 = vld [vmem:[%s6502_s9 + $0x70] sm:$0xff] }
 0x892   : > { %5019 = vmatprep.subr.mxu0 %v5300_v1  ;;  %5040 = vmatpush3.msra.mxu1 %v2275_v27  ;;  %v3640_v27 = vld [vmem:[%s6502_s9 + $0x68] sm:$0xff] }
 0x893   : > { %5020 = vmatpush3.msra.mxu0 %v2264_v28  ;;  %5041 = vmatprep.subr.mxu1 %v5300_v1  ;;  %v3639_v28 = vld [vmem:[%s6502_s9 + $0x60] sm:$0xff] }
 0x894   : > { %5042 = vmatpush3.msra.mxu1 %v2274_v29  ;;  %5050 = vmatprep.subr.mxu0 %v5300_v1  ;;  %v3638_v29 = vld [vmem:[%s6502_s9 + $0x58] sm:$0xff] }
 0x895   : > { %5043 = vmatprep.subr.mxu1 %v5300_v1 }
 0x896   : > { %5044 = vmatpush3.msra.mxu1 %v2273_v30  ;;  %v3637_v30 = vld [vmem:[%s6502_s9 + $0x50] sm:$0xff] }
 0x897   : > { %5045 = vmatprep.subr.mxu1 %v5300_v1 }
 0x898   : > { %5046 = vmatpush3.msra.mxu1 %v2272_v31  ;;  %v3636_v31 = vld [vmem:[%s6502_s9 + $0x48] sm:$0xff] }
 0x899   : > { %5076 = vmatprep.subr.mxu1 %v5300_v1 }
 0x93e   : > { %v3019_v32 = vpop.f32.mrf.mxu0 }
 0x93f   : > { %v3023_v33 = vadd.f32 %v3019_v32, %v6118_v9  ;;  %v3628_v9 = vld [vmem:[%s6502_s9 + $0x8] sm:$0xff]  ;;  %v3635_v32 = vld [vmem:[%s6502_s9 + $0x40] sm:$0xff] }
 0x940   : > { %v4971_v56 = vpop.f32.mrf.mxu0 }
 0x941   : > { %v3658_v56 = vld [vmem:[%s6502_s9 + $0xf8] sm:$0xff] }
 0x942   : > { %v3166_v59 = vpop.f32.mrf.mxu1  ;;  %v3240_v61 = vpop.f32.mrf.mxu0 }
 0x943   : > { %v3170_v62 = vadd.f32 %v3166_v59, %v3023_v33  ;;  %5022 = vmatmul.mubr.msk.f32.vlgmr.msra.gmra.mxu0 %vm2436_vm12, %v3240_v61  ;;  %v3657_v59 = vld [vmem:[%s6502_s9 + $0xf0] sm:$0xff]  ;;  %v3656_v61 = vld [vmem:[%s6502_s9 + $0xe8] sm:$0xff] }
 0x944   : > { %5051 = vmatpush3.msra.mxu0 %v5847_v53  ;;  %v4997_v63 = vpop.f32.mrf.mxu1  ;;  %v5004_v34 = vpop.f32.mrf.mxu0  ;;  %5054 = vmatprep.mubr.msk.f32.mxu0 %vm5301_vm0, %v5300_v1  ;;  %v2286_v53 = vld [vmem:[%s6500_s7 + $0x230] sm:$0xff] }
 0x945   : > { %5052 = vmatprep.subr.mxu0 %v5300_v1  ;;  %v3654_v63 = vld [vmem:[%s6502_s9 + $0xd8] sm:$0xff]  ;;  %v3653_v34 = vld [vmem:[%s6502_s9 + $0xd0] sm:$0xff] }
 0x946   : > { %5053 = vmatpush3.msra.mxu0 %v5857_v58  ;;  %v3387_v36 = vpop.f32.mrf.mxu1  ;;  %v2285_v58 = vld [vmem:[%s6500_s7 + $0x228] sm:$0xff] }
 0x947   : > { %5048 = vmatmul.mubr.msk.f32.vlgmr.msra.gmra.mxu1 %vm2436_vm12, %v3387_v36  ;;  %5055 = vmatmul.mubr.msk.f32.vlgmr.msra.gmra.mxu0 %vm2289_vm11, %v2215_v35  ;;  %v3652_v35 = vld [vmem:[%s6502_s9 + $0xc8] sm:$0xff]  ;;  %v3651_v36 = vld [vmem:[%s6502_s9 + $0xc0] sm:$0xff] }
 0x948   : > { %5057 = vmatprep.subr.mxu0 %v5300_v1  ;;  %v5030_v38 = vpop.f32.mrf.mxu1  ;;  %5073 = vmatprep.mubr.msk.f32.mxu0 %vm5301_vm0, %v5300_v1 }
 0x949   : > { %5058 = vmatpush3.msra.mxu0 %v2287_v37  ;;  %5092 = vmatprep.mubr.msk.f32.mxu1 %vm5301_vm0, %v5300_v1 }
 0x94a   : > { %5059 = vmatprep.subr.mxu0 %v5300_v1  ;;  %5077 = vmatpush3.msra.mxu1 %v3634_v52 }
 0x94b   : > { %5060 = vmatpush3.msra.mxu0 %v2286_v53  ;;  %5078 = vmatprep.subr.mxu1 %v5300_v1 }
 0x94c   : > { %5061 = vmatprep.subr.mxu0 %v5300_v1  ;;  %5079 = vmatpush3.msra.mxu1 %v3633_v55 }
 0x94d   : > { %5062 = vmatpush3.msra.mxu0 %v2285_v58  ;;  %5080 = vmatprep.subr.mxu1 %v5300_v1  ;;  %v4038_v58 = vld [vmem:[%s6506_s13 + $0x38] sm:$0xff] }
 0x94e   : > { %5063 = vmatprep.subr.mxu0 %v5300_v1  ;;  %5081 = vmatpush3.msra.mxu1 %v3632_v0 }
 0x94f   : > { %5064 = vmatpush3.msra.mxu0 %v2284_v39  ;;  %5082 = vmatprep.subr.mxu1 %v5300_v1  ;;  %v4037_v39 = vld [vmem:[%s6506_s13 + $0x30] sm:$0xff] }
 0x950   : > { %5065 = vmatprep.subr.mxu0 %v5300_v1  ;;  %5083 = vmatpush3.msra.mxu1 %v3631_v3 }
 0x951   : > { %5066 = vmatpush3.msra.mxu0 %v2283_v40  ;;  %5084 = vmatprep.subr.mxu1 %v5300_v1  ;;  %v4036_v40 = vld [vmem:[%s6506_s13 + $0x28] sm:$0xff] }
 0x952   : > { %5067 = vmatprep.subr.mxu0 %v5300_v1  ;;  %5085 = vmatpush3.msra.mxu1 %v3630_v5 }
 0x953   : > { %5068 = vmatpush3.msra.mxu0 %v2282_v41  ;;  %5086 = vmatprep.subr.mxu1 %v5300_v1  ;;  %v4035_v41 = vld [vmem:[%s6506_s13 + $0x20] sm:$0xff] }
 0x954   : > { %5069 = vmatprep.subr.mxu0 %v5300_v1  ;;  %5087 = vmatpush3.msra.mxu1 %v3629_v7 }
 0x955   : > { %5070 = vmatpush3.msra.mxu0 %v2281_v42  ;;  %5088 = vmatprep.subr.mxu1 %v5300_v1  ;;  %v4034_v42 = vld [vmem:[%s6506_s13 + $0x18] sm:$0xff] }
 0x956   : > { %5071 = vmatprep.subr.mxu0 %v5300_v1  ;;  %5089 = vmatpush3.msra.mxu1 %v3628_v9 }
 0x957   : > { %5072 = vmatpush3.msra.mxu0 %v2280_v43  ;;  %5090 = vmatprep.subr.mxu1 %v5300_v1  ;;  %v4033_v43 = vld [vmem:[%s6506_s13 + $0x10] sm:$0xff] }
 0x958   : > { %5095 = vmatprep.subr.mxu0 %v5300_v1  ;;  %5091 = vmatpush3.msra.mxu1 %v3627_v11 }
 0x959   : > { %5100 = vmatprep.subr.mxu1 %v5300_v1 }
 0xa03   : > { %v3313_v44 = vpop.f32.mrf.mxu0 }
 0xa04   : > { %v3317_v45 = vadd.f32 %v3313_v44, %v3170_v62  ;;  %v3655_v62 = vld [vmem:[%s6502_s9 + $0xe0] sm:$0xff]  ;;  %v4032_v44 = vld [vmem:[%s6506_s13 + $0x8] sm:$0xff] }
 0xa05   : > { %v5023_v46 = vpop.f32.mrf.mxu0 }
 0xa07   : > { %v3460_v47 = vpop.f32.mrf.mxu1  ;;  %v3534_v48 = vpop.f32.mrf.mxu0 }
 0xa08   : > { %v6259_v49 = vadd.f32 %v3460_v47, %v3317_v45  ;;  %5074 = vmatmul.mubr.msk.f32.vlgmr.msra.gmra.mxu0 %vm2436_vm12, %v3534_v48  ;;  %v4031_v45 = vld [vmem:[%s6506_s13] sm:$0xff] }
 0xa09   : > { %v5056_v50 = vpop.f32.mrf.mxu0  ;;  %v5049_v51 = vpop.f32.mrf.mxu1  ;;  %5097 = vmatprep.mubr.msk.f32.mxu0 %vm5301_vm0, %v5300_v1  ;;  %5096 = vmatpush3.msra.mxu0 %v3626_v54 }
 0xa0a   : > { %5119 = vmatprep.subr.mxu0 %v5300_v1 }
 0xa0c   : > { %5098 = vmatmul.mubr.msk.f32.vlgmr.msra.gmra.mxu0 %vm3732_vm13, %v3625_v57 }
 0xa0d   : > { %5120 = vmatpush3.msra.mxu0 %v3650_v60  ;;  %5135 = vmatprep.mubr.msk.f32.mxu0 %vm5301_vm0, %v5300_v1  ;;  %v4028_v60 = vld [vmem:[%s6505_s12] sm:$0x1] }
 0xa0e   : > { %5121 = vmatprep.subr.mxu0 %v5300_v1 }
 0xa0f   : > { %5122 = vmatpush3.msra.mxu0 %v3649_v2 }
 0xa10   : > { %5123 = vmatprep.subr.mxu0 %v5300_v1 }
 0xa11   : > { %5124 = vmatpush3.msra.mxu0 %v3648_v4  ;;  %v4039_v4 = vld [vmem:[%s6507_s14] sm:$0x1] }
 0xa12   : > { %5125 = vmatprep.subr.mxu0 %v5300_v1 }
 0xa13   : > { %5126 = vmatpush3.msra.mxu0 %v3647_v6 }
 0xa14   : > { %5127 = vmatprep.subr.mxu0 %v5300_v1 }
 0xa15   : > { %5128 = vmatpush3.msra.mxu0 %v3646_v8 }
 0xa16   : > { %5129 = vmatprep.subr.mxu0 %v5300_v1 }
 0xa17   : > { %5130 = vmatpush3.msra.mxu0 %v3645_v10 }
 0xa18   : > { %5131 = vmatprep.subr.mxu0 %v5300_v1 }
 0xa19   : > { %5132 = vmatpush3.msra.mxu0 %v3644_v12 }
 0xa1a   : > { %5133 = vmatprep.subr.mxu0 %v5300_v1 }
 0xa1b   : > { %5134 = vmatpush3.msra.mxu0 %v3643_v13 }
 0xa1c   : > { %5157 = vmatprep.subr.mxu0 %v5300_v1 }
 0xac8   : > { %v3607_v15 = vpop.f32.mrf.mxu0 }
 0xac9   : > { %v3611_v16 = vadd.f32 %v3607_v15, %v6259_v49 }
 0xaca   : > { %v5075_v17 = vpop.f32.mrf.mxu0 }
 0xacb   : > { %v3618_v18 = vadd.f32 %v4275_v14, %v3611_v16 }
 0xacc   : > { %v3802_v53 = vpop.f32.mrf.mxu0 }
 0xacd   : > { %v3620_v19 = vmin.f32 %v3618_v18, 0.0  ;;  %vm3619_vm14 = vcmp.gt.f32.partialorder %v3618_v18, 0.0 }
 0xace   : > { %v5099_v38 = vpop.f32.mrf.mxu0 }
 0xacf   : > { %v3621_v20 = vmul.f32 1.442695, %v3620_v19 }
 0xad1   : > { %5232 = vpow2.f32 %v3621_v20 }
 0xade   : > { %v5233_v21 = vpop.eup %5232 }
 0xadf   : > { %v4276_v22 = vadd.f32 -1.0, %v5233_v21 }
 0xae1   : > { %v3624_v24 = vsel %vm3619_vm14, %v3618_v18, %v4276_v22 }
 0xae2   : > { %5093 = vmatmul.mubr.msk.f32.vlgmr.msra.gmra.mxu1 %vm2436_vm12, %v3624_v24  ;;  %v3880_v25 = vrot.slane %v3624_v24, 2  ;;  %v3806_v33 = vrot.slane %v3624_v24, 1  ;;  %v3954_v37 = vrot.slane %v3624_v24, 3 }
 0xae3   : > { %5101 = vmatpush3.msra.mxu1 %v3642_v23  ;;  %5116 = vmatprep.mubr.msk.f32.mxu1 %vm5301_vm0, %v5300_v1 }
 0xae4   : > { %5102 = vmatprep.subr.mxu1 %v5300_v1  ;;  %5136 = vmatmul.mubr.msk.f32.vlgmr.msra.gmra.mxu0 %vm2436_vm12, %v3880_v25 }
 0xae5   : > { %5103 = vmatpush3.msra.mxu1 %v3641_v26  ;;  %5173 = vmatprep.mubr.msk.f32.mxu0 %vm5301_vm0, %v5300_v1 }
 0xae6   : > { %5104 = vmatprep.subr.mxu1 %v5300_v1  ;;  %5158 = vmatpush3.msra.mxu0 %v4038_v58 }
 0xae7   : > { %5105 = vmatpush3.msra.mxu1 %v3640_v27  ;;  %5159 = vmatprep.subr.mxu0 %v5300_v1 }
 0xae8   : > { %5106 = vmatprep.subr.mxu1 %v5300_v1  ;;  %5160 = vmatpush3.msra.mxu0 %v4037_v39 }
 0xae9   : > { %5107 = vmatpush3.msra.mxu1 %v3639_v28  ;;  %5161 = vmatprep.subr.mxu0 %v5300_v1 }
 0xaea   : > { %5108 = vmatprep.subr.mxu1 %v5300_v1  ;;  %5162 = vmatpush3.msra.mxu0 %v4036_v40 }
 0xaeb   : > { %5109 = vmatpush3.msra.mxu1 %v3638_v29  ;;  %5163 = vmatprep.subr.mxu0 %v5300_v1 }
 0xaec   : > { %5110 = vmatprep.subr.mxu1 %v5300_v1  ;;  %5164 = vmatpush3.msra.mxu0 %v4035_v41 }
 0xaed   : > { %5111 = vmatpush3.msra.mxu1 %v3637_v30  ;;  %5165 = vmatprep.subr.mxu0 %v5300_v1 }
 0xaee   : > { %5112 = vmatprep.subr.mxu1 %v5300_v1  ;;  %5166 = vmatpush3.msra.mxu0 %v4034_v42 }
 0xaef   : > { %5113 = vmatpush3.msra.mxu1 %v3636_v31  ;;  %5167 = vmatprep.subr.mxu0 %v5300_v1 }
 0xaf0   : > { %5114 = vmatprep.subr.mxu1 %v5300_v1  ;;  %5168 = vmatpush3.msra.mxu0 %v4033_v43 }
 0xaf1   : > { %5115 = vmatpush3.msra.mxu1 %v3635_v32  ;;  %5169 = vmatprep.subr.mxu0 %v5300_v1 }
 0xaf2   : > { %5117 = vmatmul.mubr.msk.f32.vlgmr.msra.gmra.mxu1 %vm2436_vm12, %v3806_v33  ;;  %5138 = vmatprep.subr.mxu1 %v5300_v1 }
 0xaf3   : > { %5139 = vmatpush3.msra.mxu1 %v3658_v56  ;;  %5154 = vmatprep.mubr.msk.f32.mxu1 %vm5301_vm0, %v5300_v1 }
 0xaf4   : > { %5140 = vmatprep.subr.mxu1 %v5300_v1  ;;  %5170 = vmatpush3.msra.mxu0 %v4032_v44 }
 0xaf5   : > { %5141 = vmatpush3.msra.mxu1 %v3657_v59  ;;  %5171 = vmatprep.subr.mxu0 %v5300_v1 }
 0xaf6   : > { %5142 = vmatprep.subr.mxu1 %v5300_v1  ;;  %5172 = vmatpush3.msra.mxu0 %v4031_v45 }
 0xaf7   : > { %5143 = vmatpush3.msra.mxu1 %v3656_v61 }
 0xaf8   : > { %5144 = vmatprep.subr.mxu1 %v5300_v1 }
 0xaf9   : > { %5145 = vmatpush3.msra.mxu1 %v3655_v62 }
 0xafa   : > { %5146 = vmatprep.subr.mxu1 %v5300_v1 }
 0xafb   : > { %5147 = vmatpush3.msra.mxu1 %v3654_v63 }
 0xafc   : > { %5148 = vmatprep.subr.mxu1 %v5300_v1 }
 0xafd   : > { %5149 = vmatpush3.msra.mxu1 %v3653_v34 }
 0xafe   : > { %5150 = vmatprep.subr.mxu1 %v5300_v1 }
 0xaff   : > { %5151 = vmatpush3.msra.mxu1 %v3652_v35 }
 0xb00   : > { %5152 = vmatprep.subr.mxu1 %v5300_v1 }
 0xb01   : > { %5153 = vmatpush3.msra.mxu1 %v3651_v36 }
 0xb02   : > { %5155 = vmatmul.mubr.msk.f32.vlgmr.msra.gmra.mxu1 %vm2436_vm12, %v3954_v37 }
 0xba2   : > { %v3728_v46 = vpop.f32.mrf.mxu1 }
 0xba3   : > { %v3803_v52 = vadd.f32 %v3802_v53, %v3728_v46 }
 0xba4   : > { %v5094_v47 = vpop.f32.mrf.mxu1  ;;  %v3949_v48 = vpop.f32.mrf.mxu0 }
 0xba6   : > { %v5137_v49 = vpop.f32.mrf.mxu0 }
 0xbb2   : > { %v3875_v50 = vpop.f32.mrf.mxu1 }
 0xbb3   : > { %v3879_v54 = vadd.f32 %v3875_v50, %v3803_v52 }
 0xbb4   : > { %v5118_v51 = vpop.f32.mrf.mxu1 }
 0xbb5   : > { %v3953_v55 = vadd.f32 %v3949_v48, %v3879_v54 }
 0xbc2   : > { %v4023_v57 = vpop.f32.mrf.mxu1 }
 0xbc3   : > { %v4027_v1 = vadd.f32 %v4023_v57, %v3953_v55 }
 0xbc4   : > { %v5156_v0 = vpop.f32.mrf.mxu1 }
 0xbc5   : > { %v4029_v2 = vadd.f32 %v4028_v60, %v4027_v1 }
 0xbc7   : > { %v4030_v3 = vmax.f32 %v4029_v2, 0.0 }
 0xbc9   : > { %5174 = vmatmul.mubr.msk.f32.vlgmr.msra.gmra.mxu0 %vm2436_vm12, %v4030_v3 }
 0xc89   : > { %v4109_v5 = vpop.f32.mrf.mxu0 }
 0xc8a   : > { %v4110_v6 = vadd.f32 %v4109_v5, %v4039_v4 }
 0xc8b   : > { %v5175_v7 = vpop.f32.mrf.mxu0 }
 0xc8c   : > { %v4113_v8 = vsub.f32 0.0, %v4110_v6 }
 0xc8e   : > { %v4114_v9 = vmul.f32 1.442695, %v4113_v8 }
 0xc90   : > { %5234 = vpow2.f32 %v4114_v9 }
 0xc9d   : > { %v5235_v10 = vpop.eup %5234 }
 0xc9e   : > { %v4116_v11 = vadd.f32 1.0, %v5235_v10 }
 0xca0   : > { %5236 = vrcp.f32 %v4116_v11 }
 0xcad   : > { %v5237_v12 = vpop.eup %5236 }
 0xcae   : > { %4120 = vst.msk [vmem:[%s497_s24] sm:$0x1] %vm4119_vm15, %v5237_v12 }
 0xcaf   : > { %5251 = shalt.err (!%p5248_p3)
}
 0xcb0   : > { %s5252_s16 = scalar_lea.hbm %s6458_s25, 16  ;;  %s5256_s24 = scalar_lea.hbm %s6508_s15, 32 }
 0xcb1   : > { %p5253_p4 = scmp.ne.s32.totalorder %s6458_s25, %s5252_s16  ;;  %p5257_p9 = scmp.lt.s32.totalorder %s6458_s25, %s6508_s15 }
 0xcb2   : > { %p5258_p10 = scmp.lt.s32.totalorder %s5256_s24, %s5252_s16 }
 0xcb3   : > { %p5254_p7 = pnand %p5253_p4, %p5421_p5 }
 0xcb4   : > { %p5259_p11 = por %p5258_p10, %p5257_p9 }
 0xcb5   : > { %p5255_p8 = pneg %p5254_p7 }
 0xcb7   : > { %p5260_p12 = pnand %p5259_p11, %p5255_p8 }
 0xcb9   : > { %5263 = shalt.err (!%p5260_p12)
}
 0xcba   : > { %5177 = dma.vmem_to_hbm [thread:$0]  (%p5421_p5), %s4135_s29, 16, %s6458_s25, %s4122_s27  }
 0xcbb PF: > { %s6523_s26 = sld [smem:[#allocation5_spill]]  ;;  %p5183_p13 = scmp.ge.s32.totalorder %s5298_s21, 2 }
 0xcbd   : > { %p5180_p0 = pnand %p5183_p13, %p5425_p6 }
 0xcbf   : > { %p5181_p1 = pneg %p5180_p0 }
 0xcc1   : > { %s4146_s30 = sand.u32 1, %s6523_s26  }
 0xcc2   : > { %s4147_s22 = scalar_lea.sflag [#allocation3], %s4146_s30 }
 0xcc3   : > { %5281 = dma.done.wait (%p5181_p1), %s4147_s22, 16  }
 0xcc4   : > { %5283 = vsyncadd (%p5181_p1), %s4147_s22, 4294967280  ;;  %s6525_s21 = sld [smem:[#allocation7_spill]]  ;;  %s6528_s18 = smov %s5290_s19 }
 0xcc5   : > { %s6526_s16 = sld [smem:[#allocation6_spill]] }
 0xcc6   : > { %s6527_s20 = sld [smem:[#allocation8_spill]] }
 0xcca   : > { %p25_p2 = scmp.ge.s32.totalorder %s6525_s21, 4  }
 0xccb   : > { %s6529_s19 = smov %s6526_s16 }
 0xccc   :  { %27 = sbr.rel (!%p25_p2) target bundleno = 5 (0x5), region = 118 }
 0xcd1   :  { %4151 = vsyncpa [#allocation3], 1 }
 0xcd2   :  { %4153 = vsyncpa [#allocation3 + $0x1], 1 }

</bundles_post_ra>
